<compile_context>
chip_gen: v6e
topology: v6e:2x2x1
jax: 0.10.0
libtpu: 0.0.40
codegen_flags: <defaults>
</compile_context>

<pallas_src>
import functools
import math

import numpy as np
import jax
import jax.numpy as jnp
from jax import lax
from jax.experimental import pallas as pl
from jax.experimental.pallas import tpu as pltpu


def _round_up(a, b):
    return (a + b - 1) // b * b


def _ceil_div(a, b):
    return -(-a // b)


# ---------------------------------------------------------------------------
# Kernel A: fused-tap conv matmul + per-(image, lane-tile) partial statistics
# ---------------------------------------------------------------------------
def _conv_stats_kernel(x_ref, w_ref, mask_ref, z_ref, sum_ref, sq_ref, *,
                       taps, cin, lane_tile):
    # x_ref:    (1, 1, Ck, Pt)    bf16  flattened phase-plane input window
    # w_ref:    (Cout, k*k*Cin)   bf16  tap-fused weight matrix
    # mask_ref: (1, Lt)           f32   1.0 on valid output lanes, 0.0 on garbage
    # z_ref:    (1, Cout, Lt)     bf16  raw conv output slab (lane-dense)
    # sum_ref/sq_ref: (1,1,Cout,1) f32  partial statistics for this (n, tile)
    pieces = [x_ref[0, 0, pl.ds(rs, cin), pl.ds(off, lane_tile)]
              for rs, off in taps]               # static slices, k*k unrolled
    rhs = pieces[0] if len(pieces) == 1 else jnp.concatenate(pieces, axis=0)
    acc = jnp.dot(w_ref[...], rhs, preferred_element_type=jnp.float32)  # (Cout, Lt)

    z_ref[...] = acc[None].astype(z_ref.dtype)

    masked = acc * mask_ref[...]                 # zero out garbage lanes
    sum_ref[...] = jnp.sum(masked, axis=-1, keepdims=True)[None, None]
    sq_ref[...] = jnp.sum(masked * acc, axis=-1, keepdims=True)[None, None]


# ---------------------------------------------------------------------------
# Kernel B: z*scale + bias, ReLU, strip garbage columns -> NCHW output
# ---------------------------------------------------------------------------
def _bn_relu_strip_kernel(z_ref, scale_ref, bias_ref, o_ref, *, wq, ow, oh):
    y = jnp.maximum(
        z_ref[0].astype(jnp.float32) * scale_ref[...] + bias_ref[...], 0.0)
    for r in range(oh):                          # static, unrolled row stores
        o_ref[0, :, r, :] = y[:, r * wq:r * wq + ow]


# ---------------------------------------------------------------------------
# Wrapper
# ---------------------------------------------------------------------------
@functools.partial(jax.jit, static_argnames=("stride", "padding", "eps"))
def conv_block_forward(x, weight, gamma, beta, *, stride, padding, eps=1e-5):
    """Conv2d(bias=False) -> BatchNorm2d(train-mode batch stats) -> ReLU."""
    N, Cin, H, W = x.shape
    Cout, _, k, _ = weight.shape
    s = int(stride)
    Hp, Wp = H + 2 * padding, W + 2 * padding
    OH = (Hp - k) // s + 1
    OW = (Wp - k) // s + 1
    Hq, Wq = _ceil_div(Hp, s), _ceil_div(Wp, s)          # phase-plane dims

    # Lane space of the conv output: j = oh*Wq + ow. Columns ow >= OW and
    # lanes >= OH*Wq are garbage from the flat-shift trick (masked / stripped).
    lane_tile = min(2048, _round_up(OH * Wq, 128))
    T = _ceil_div(OH * Wq, lane_tile)
    Lp = T * lane_tile

    qmax = (k - 1) // s
    off_max = qmax * Wq + qmax                           # max static tap offset
    Pt = _round_up(lane_tile + off_max, 128)             # per-tile input window
    Pglobal = (T - 1) * lane_tile + Pt
    Hq_ext = max(_ceil_div(Pglobal, Wq), Hq)
    Ck = s * s * Cin
    Ktot = k * k * Cin

    # ---- XLA pre-pass: one pad -> phase split -> flatten -> bf16 -> windows ----
    xp = jnp.pad(x, ((0, 0), (0, 0),
                     (padding, s * Hq_ext - H - padding),
                     (padding, s * Wq - W - padding)))
    xph = xp.reshape(N, Cin, Hq_ext, s, Wq, s).transpose(0, 3, 5, 1, 2, 4)
    x_flat = xph.reshape(N, Ck, Hq_ext * Wq).astype(jnp.bfloat16)
    if T == 1:
        x_win = x_flat[:, None, :, :Pt]                  # (N, 1, Ck, Pt)
    else:
        x_win = jnp.stack(
            [x_flat[:, :, t * lane_tile:t * lane_tile + Pt] for t in range(T)],
            axis=1)                                      # (N, T, Ck, Pt)

    # Tap-fused weights; column order (kh*k + kw)*Cin + ci matches the concat.
    w_fused = jnp.transpose(weight, (0, 2, 3, 1)).reshape(Cout, Ktot)
    w_fused = w_fused.astype(jnp.bfloat16)
    # Per-tap (row-group start in the phase-stacked channels, static lane offset).
    taps = tuple((((kh % s) * s + (kw % s)) * Cin, (kh // s) * Wq + kw // s)
                 for kh in range(k) for kw in range(k))

    jj = np.arange(Lp)
    mask = jnp.asarray(((jj % Wq < OW) & (jj < OH * Wq)).astype(np.float32)[None])

    vmem_a = (2 * (Ck * Pt * 2 + Cout * Ktot * 2 + lane_tile * 4
                   + Cout * lane_tile * 2 + 2 * Cout * 4)
              + Ktot * lane_tile * 2 + 3 * Cout * lane_tile * 4 + (4 << 20))
    kernel_a = functools.partial(_conv_stats_kernel, taps=taps, cin=Cin,
                                 lane_tile=lane_tile)
    z, sum_p, sq_p = pl.pallas_call(
        kernel_a,
        grid=(N, T),
        in_specs=[
            pl.BlockSpec((1, 1, Ck, Pt), lambda n, t: (n, t, 0, 0)),
            pl.BlockSpec((Cout, Ktot), lambda n, t: (0, 0)),      # invariant
            pl.BlockSpec((1, lane_tile), lambda n, t: (0, t)),
        ],
        out_specs=[
            pl.BlockSpec((1, Cout, lane_tile), lambda n, t: (n, 0, t)),
            pl.BlockSpec((1, 1, Cout, 1), lambda n, t: (n, t, 0, 0)),
            pl.BlockSpec((1, 1, Cout, 1), lambda n, t: (n, t, 0, 0)),
        ],
        out_shape=(
            jax.ShapeDtypeStruct((N, Cout, Lp), jnp.bfloat16),
            jax.ShapeDtypeStruct((N, T, Cout, 1), jnp.float32),
            jax.ShapeDtypeStruct((N, T, Cout, 1), jnp.float32),
        ),
        compiler_params=pltpu.CompilerParams(
            dimension_semantics=("parallel", "parallel"),
            vmem_limit_bytes=min(max(vmem_a, 8 << 20), 64 << 20)),
    )(x_win, w_fused, mask)

    # ---- fold BN (biased batch stats) + affine into per-channel scale/bias ----
    m = float(N * OH * OW)
    mean = jnp.sum(sum_p, axis=(0, 1, 3)) / m
    var = jnp.sum(sq_p, axis=(0, 1, 3)) / m - mean * mean     # biased (training)
    var = jnp.maximum(var, 0.0)                               # cancellation guard
    scale = gamma * lax.rsqrt(var + eps)
    bias = beta - mean * scale
    scale = scale.reshape(Cout, 1).astype(jnp.float32)
    bias = bias.reshape(Cout, 1).astype(jnp.float32)

    vmem_b = (2 * (Cout * Lp * 2 + Cout * OH * OW * 4 + 2 * Cout * 4)
              + 2 * Cout * Lp * 4 + (4 << 20))
    kernel_b = functools.partial(_bn_relu_strip_kernel, wq=Wq, ow=OW, oh=OH)
    out = pl.pallas_call(
        kernel_b,
        grid=(N,),
        in_specs=[
            pl.BlockSpec((1, Cout, Lp), lambda n: (n, 0, 0)),
            pl.BlockSpec((Cout, 1), lambda n: (0, 0)),
            pl.BlockSpec((Cout, 1), lambda n: (0, 0)),
        ],
        out_specs=pl.BlockSpec((1, Cout, OH, OW), lambda n: (n, 0, 0, 0)),
        out_shape=jax.ShapeDtypeStruct((N, Cout, OH, OW), jnp.float32),
        compiler_params=pltpu.CompilerParams(
            dimension_semantics=("parallel",),
            vmem_limit_bytes=min(max(vmem_b, 8 << 20), 64 << 20)),
    )(z, scale, bias)
    # TODO(synk): BatchNorm running_mean/running_var buffer updates are stateful
    # training-side bookkeeping and do not affect the forward output; not done.
    return out


# ---------------------------------------------------------------------------
# Pure-JAX reference (correctness check)
# ---------------------------------------------------------------------------
def _reference(x, weight, gamma, beta, *, stride, padding, eps=1e-5):
    y = lax.conv_general_dilated(
        x, weight, (stride, stride),
        [(padding, padding), (padding, padding)],
        dimension_numbers=("NCHW", "OIHW", "NCHW"))
    mean = y.mean(axis=(0, 2, 3), keepdims=True)
    var = y.var(axis=(0, 2, 3), keepdims=True)            # biased -> BN training
    scale = gamma.reshape(1, -1, 1, 1) * lax.rsqrt(var + eps)
    bias = beta.reshape(1, -1, 1, 1) - mean * scale
    return jnp.maximum(y * scale + bias, 0.0)


if __name__ == "__main__":
    # ConvBlock(in_channels=4, out_channels=8, kernel_size=3, batch_norm=True)
    N, Cin, H, W = 2, 4, 16, 16
    Cout, k = 8, 3

    key = jax.random.PRNGKey(0)
    kx, kw = jax.random.split(key)
    x = jax.random.normal(kx, (N, Cin, H, W), dtype=jnp.float32)
    fan_in = Cin * k * k
    bound = 1.0 / math.sqrt(fan_in)
    weight = jax.random.uniform(kw, (Cout, Cin, k, k), jnp.float32, -bound, bound)
    gamma = jnp.ones((Cout,), jnp.float32)       # PyTorch BatchNorm2d default init
    beta = jnp.zeros((Cout,), jnp.float32)

    for stride, padding in ((1, 1), (2, 1)):     # stride=2 exercises phase planes
        out = conv_block_forward(x, weight, gamma, beta,
                                 stride=stride, padding=padding)
        out = jax.block_until_ready(out)
        OH = (H + 2 * padding - k) // stride + 1
        OW = (W + 2 * padding - k) // stride + 1
        assert out.shape == (N, Cout, OH, OW), out.shape

        # (1) vs a reference fed the same bf16-rounded MXU operands (residual
        #     error is the bf16 intermediate z quantization).
        xb = x.astype(jnp.bfloat16).astype(jnp.float32)
        wb = weight.astype(jnp.bfloat16).astype(jnp.float32)
        err_b = float(jnp.max(jnp.abs(
            out - _reference(xb, wb, gamma, beta, stride=stride, padding=padding))))
        assert err_b < 5e-2, (stride, err_b)

        # (2) vs the full-f32 module (bf16 MXU operands -> looser tolerance).
        err = float(jnp.max(jnp.abs(
            out - _reference(x, weight, gamma, beta, stride=stride, padding=padding))))
        assert err < 1e-1, (stride, err)

    print("KERNEL_OK")
</pallas_src>

<mosaic_0001>
module attributes {stable_mosaic.version = 11 : i64} {
  func.func @_conv_stats_kernel(%arg0: i32, %arg1: i32, %arg2: memref<1x1x4x512xbf16, #tpu.memory_space<vmem>>, %arg3: memref<8x36xbf16, #tpu.memory_space<vmem>>, %arg4: memref<1x384xf32, #tpu.memory_space<vmem>>, %arg5: memref<1x8x384xbf16, #tpu.memory_space<vmem>>, %arg6: memref<1x1x8x1xf32, #tpu.memory_space<vmem>>, %arg7: memref<1x1x8x1xf32, #tpu.memory_space<vmem>>) attributes {dimension_semantics = [#tpu.dimension_semantics<parallel>, #tpu.dimension_semantics<parallel>], iteration_bounds = array<i64: 2, 1>, scalar_prefetch = 0 : i64, scratch_operands = 0 : i64, tpu.core_type = #tpu.core_type<tc>, window_params = [{transform_indices = @transform_0, window_bounds = array<i64: 1, 1, 4, 512>}, {pipeline_mode = #tpu.pipeline_mode<synchronous>, transform_indices = @transform_1, window_bounds = array<i64: 8, 36>}, {transform_indices = @transform_2, window_bounds = array<i64: 1, 384>}, {transform_indices = @transform_3, window_bounds = array<i64: 1, 8, 384>}, {transform_indices = @transform_4, window_bounds = array<i64: 1, 1, 8, 1>}, {transform_indices = @transform_5, window_bounds = array<i64: 1, 1, 8, 1>}]} {
    %c0 = arith.constant 0 : index
    %c0_0 = arith.constant 0 : index
    %c0_1 = arith.constant 0 : index
    %c0_2 = arith.constant 0 : index
    %0 = vector.load %arg2[%c0, %c0_0, %c0_1, %c0_2] : memref<1x1x4x512xbf16, #tpu.memory_space<vmem>>, vector<1x1x4x384xbf16>
    %1 = vector.shape_cast %0 : vector<1x1x4x384xbf16> to vector<4x384xbf16>
    %c0_3 = arith.constant 0 : index
    %c0_4 = arith.constant 0 : index
    %c0_5 = arith.constant 0 : index
    %c1 = arith.constant 1 : index
    %2 = vector.load %arg2[%c0_3, %c0_4, %c0_5, %c1] : memref<1x1x4x512xbf16, #tpu.memory_space<vmem>>, vector<1x1x4x384xbf16>
    %3 = vector.shape_cast %2 : vector<1x1x4x384xbf16> to vector<4x384xbf16>
    %c0_6 = arith.constant 0 : index
    %c0_7 = arith.constant 0 : index
    %c0_8 = arith.constant 0 : index
    %c2 = arith.constant 2 : index
    %4 = vector.load %arg2[%c0_6, %c0_7, %c0_8, %c2] : memref<1x1x4x512xbf16, #tpu.memory_space<vmem>>, vector<1x1x4x384xbf16>
    %5 = vector.shape_cast %4 : vector<1x1x4x384xbf16> to vector<4x384xbf16>
    %c0_9 = arith.constant 0 : index
    %c0_10 = arith.constant 0 : index
    %c0_11 = arith.constant 0 : index
    %c18 = arith.constant 18 : index
    %6 = vector.load %arg2[%c0_9, %c0_10, %c0_11, %c18] : memref<1x1x4x512xbf16, #tpu.memory_space<vmem>>, vector<1x1x4x384xbf16>
    %7 = vector.shape_cast %6 : vector<1x1x4x384xbf16> to vector<4x384xbf16>
    %c0_12 = arith.constant 0 : index
    %c0_13 = arith.constant 0 : index
    %c0_14 = arith.constant 0 : index
    %c19 = arith.constant 19 : index
    %8 = vector.load %arg2[%c0_12, %c0_13, %c0_14, %c19] : memref<1x1x4x512xbf16, #tpu.memory_space<vmem>>, vector<1x1x4x384xbf16>
    %9 = vector.shape_cast %8 : vector<1x1x4x384xbf16> to vector<4x384xbf16>
    %c0_15 = arith.constant 0 : index
    %c0_16 = arith.constant 0 : index
    %c0_17 = arith.constant 0 : index
    %c20 = arith.constant 20 : index
    %10 = vector.load %arg2[%c0_15, %c0_16, %c0_17, %c20] : memref<1x1x4x512xbf16, #tpu.memory_space<vmem>>, vector<1x1x4x384xbf16>
    %11 = vector.shape_cast %10 : vector<1x1x4x384xbf16> to vector<4x384xbf16>
    %c0_18 = arith.constant 0 : index
    %c0_19 = arith.constant 0 : index
    %c0_20 = arith.constant 0 : index
    %c36 = arith.constant 36 : index
    %12 = vector.load %arg2[%c0_18, %c0_19, %c0_20, %c36] : memref<1x1x4x512xbf16, #tpu.memory_space<vmem>>, vector<1x1x4x384xbf16>
    %13 = vector.shape_cast %12 : vector<1x1x4x384xbf16> to vector<4x384xbf16>
    %c0_21 = arith.constant 0 : index
    %c0_22 = arith.constant 0 : index
    %c0_23 = arith.constant 0 : index
    %c37 = arith.constant 37 : index
    %14 = vector.load %arg2[%c0_21, %c0_22, %c0_23, %c37] : memref<1x1x4x512xbf16, #tpu.memory_space<vmem>>, vector<1x1x4x384xbf16>
    %15 = vector.shape_cast %14 : vector<1x1x4x384xbf16> to vector<4x384xbf16>
    %c0_24 = arith.constant 0 : index
    %c0_25 = arith.constant 0 : index
    %c0_26 = arith.constant 0 : index
    %c38 = arith.constant 38 : index
    %16 = vector.load %arg2[%c0_24, %c0_25, %c0_26, %c38] : memref<1x1x4x512xbf16, #tpu.memory_space<vmem>>, vector<1x1x4x384xbf16>
    %17 = vector.shape_cast %16 : vector<1x1x4x384xbf16> to vector<4x384xbf16>
    %18 = tpu.concatenate %1, %3, %5, %7, %9, %11, %13, %15, %17 in 0 : vector<4x384xbf16>, vector<4x384xbf16>, vector<4x384xbf16>, vector<4x384xbf16>, vector<4x384xbf16>, vector<4x384xbf16>, vector<4x384xbf16>, vector<4x384xbf16>, vector<4x384xbf16> -> vector<36x384xbf16>
    %c0_27 = arith.constant 0 : index
    %c0_28 = arith.constant 0 : index
    %19 = vector.load %arg3[%c0_27, %c0_28] : memref<8x36xbf16, #tpu.memory_space<vmem>>, vector<8x36xbf16>
    %cst = arith.constant dense<0.000000e+00> : vector<8x384xf32>
    %20 = tpu.matmul %19, %18, %cst {dimension_numbers = #tpu.dot_dimension_numbers<[1], [0], [0], [1], [0, 0, 1, 1], [], []>} : vector<8x36xbf16>, vector<36x384xbf16>, vector<8x384xf32> -> vector<8x384xf32>
    %21 = vector.shape_cast %20 : vector<8x384xf32> to vector<1x8x384xf32>
    %22 = arith.truncf %21 : vector<1x8x384xf32> to vector<1x8x384xbf16>
    %c0_29 = arith.constant 0 : index
    %c0_30 = arith.constant 0 : index
    %c0_31 = arith.constant 0 : index
    %23 = vector.load %arg5[%c0_29, %c0_30, %c0_31] : memref<1x8x384xbf16, #tpu.memory_space<vmem>>, vector<1x8x384xbf16>
    tpu.vector_store %arg5[%c0_29, %c0_30, %c0_31], %22 {strides = array<i32>} : memref<1x8x384xbf16, #tpu.memory_space<vmem>>, vector<1x8x384xbf16>,
    %c0_32 = arith.constant 0 : index
    %c0_33 = arith.constant 0 : index
    %24 = vector.load %arg4[%c0_32, %c0_33] : memref<1x384xf32, #tpu.memory_space<vmem>>, vector<1x384xf32>
    %25 = vector.broadcast %24 : vector<1x384xf32> to vector<8x384xf32>
    %26 = arith.mulf %20, %25 : vector<8x384xf32>
    %cst_34 = arith.constant dense<0.000000e+00> : vector<8xf32>
    %27 = vector.multi_reduction <add>, %26, %cst_34 [1] : vector<8x384xf32> to vector<8xf32>
    %28 = vector.shape_cast %27 : vector<8xf32> to vector<8x1xf32>
    %29 = vector.shape_cast %28 : vector<8x1xf32> to vector<1x1x8x1xf32>
    %c0_35 = arith.constant 0 : index
    %c0_36 = arith.constant 0 : index
    %c0_37 = arith.constant 0 : index
    %c0_38 = arith.constant 0 : index
    %30 = vector.load %arg6[%c0_35, %c0_36, %c0_37, %c0_38] : memref<1x1x8x1xf32, #tpu.memory_space<vmem>>, vector<1x1x8x1xf32>
    tpu.vector_store %arg6[%c0_35, %c0_36, %c0_37, %c0_38], %29 {strides = array<i32>} : memref<1x1x8x1xf32, #tpu.memory_space<vmem>>, vector<1x1x8x1xf32>,
    %31 = arith.mulf %26, %20 : vector<8x384xf32>
    %cst_39 = arith.constant dense<0.000000e+00> : vector<8xf32>
    %32 = vector.multi_reduction <add>, %31, %cst_39 [1] : vector<8x384xf32> to vector<8xf32>
    %33 = vector.shape_cast %32 : vector<8xf32> to vector<8x1xf32>
    %34 = vector.shape_cast %33 : vector<8x1xf32> to vector<1x1x8x1xf32>
    %c0_40 = arith.constant 0 : index
    %c0_41 = arith.constant 0 : index
    %c0_42 = arith.constant 0 : index
    %c0_43 = arith.constant 0 : index
    %35 = vector.load %arg7[%c0_40, %c0_41, %c0_42, %c0_43] : memref<1x1x8x1xf32, #tpu.memory_space<vmem>>, vector<1x1x8x1xf32>
    tpu.vector_store %arg7[%c0_40, %c0_41, %c0_42, %c0_43], %34 {strides = array<i32>} : memref<1x1x8x1xf32, #tpu.memory_space<vmem>>, vector<1x1x8x1xf32>,
    return
  }
  func.func @transform_0(%arg0: i32, %arg1: i32) -> (i32, i32, i32, i32) {
    %c0_i32 = arith.constant 0 : i32
    %c0_i32_0 = arith.constant 0 : i32
    %c0_i32_1 = arith.constant 0 : i32
    return %arg0, %arg1, %c0_i32, %c0_i32_0 : i32, i32, i32, i32
  }
  func.func @transform_1(%arg0: i32, %arg1: i32) -> (i32, i32) {
    %c0_i32 = arith.constant 0 : i32
    %c0_i32_0 = arith.constant 0 : i32
    %c0_i32_1 = arith.constant 0 : i32
    return %c0_i32, %c0_i32_0 : i32, i32
  }
  func.func @transform_2(%arg0: i32, %arg1: i32) -> (i32, i32) {
    %c0_i32 = arith.constant 0 : i32
    %c0_i32_0 = arith.constant 0 : i32
    return %c0_i32, %arg1 : i32, i32
  }
  func.func @transform_3(%arg0: i32, %arg1: i32) -> (i32, i32, i32) {
    %c0_i32 = arith.constant 0 : i32
    %c0_i32_0 = arith.constant 0 : i32
    return %arg0, %c0_i32, %arg1 : i32, i32, i32
  }
  func.func @transform_4(%arg0: i32, %arg1: i32) -> (i32, i32, i32, i32) {
    %c0_i32 = arith.constant 0 : i32
    %c0_i32_0 = arith.constant 0 : i32
    %c0_i32_1 = arith.constant 0 : i32
    return %arg0, %arg1, %c0_i32, %c0_i32_0 : i32, i32, i32, i32
  }
  func.func @transform_5(%arg0: i32, %arg1: i32) -> (i32, i32, i32, i32) {
    %c0_i32 = arith.constant 0 : i32
    %c0_i32_0 = arith.constant 0 : i32
    %c0_i32_1 = arith.constant 0 : i32
    return %arg0, %arg1, %c0_i32, %c0_i32_0 : i32, i32, i32, i32
  }
}

module attributes {stable_mosaic.version = 11 : i64} {
  func.func @_bn_relu_strip_kernel(%arg0: i32, %arg1: memref<1x8x384xbf16, #tpu.memory_space<vmem>>, %arg2: memref<8x1xf32, #tpu.memory_space<vmem>>, %arg3: memref<8x1xf32, #tpu.memory_space<vmem>>, %arg4: memref<1x8x16x16xf32, #tpu.memory_space<vmem>>) attributes {dimension_semantics = [#tpu.dimension_semantics<parallel>], iteration_bounds = array<i64: 2>, scalar_prefetch = 0 : i64, scratch_operands = 0 : i64, tpu.core_type = #tpu.core_type<tc>, window_params = [{transform_indices = @transform_0, window_bounds = array<i64: 1, 8, 384>}, {pipeline_mode = #tpu.pipeline_mode<synchronous>, transform_indices = @transform_1, window_bounds = array<i64: 8, 1>}, {pipeline_mode = #tpu.pipeline_mode<synchronous>, transform_indices = @transform_2, window_bounds = array<i64: 8, 1>}, {transform_indices = @transform_3, window_bounds = array<i64: 1, 8, 16, 16>}]} {
    %c0 = arith.constant 0 : index
    %c0_0 = arith.constant 0 : index
    %c0_1 = arith.constant 0 : index
    %0 = vector.load %arg1[%c0, %c0_0, %c0_1] : memref<1x8x384xbf16, #tpu.memory_space<vmem>>, vector<1x8x384xbf16>
    %1 = vector.shape_cast %0 : vector<1x8x384xbf16> to vector<8x384xbf16>
    %2 = arith.extf %1 : vector<8x384xbf16> to vector<8x384xf32>
    %c0_2 = arith.constant 0 : index
    %c0_3 = arith.constant 0 : index
    %3 = vector.load %arg2[%c0_2, %c0_3] : memref<8x1xf32, #tpu.memory_space<vmem>>, vector<8x1xf32>
    %4 = vector.broadcast %3 : vector<8x1xf32> to vector<8x384xf32>
    %5 = arith.mulf %2, %4 : vector<8x384xf32>
    %c0_4 = arith.constant 0 : index
    %c0_5 = arith.constant 0 : index
    %6 = vector.load %arg3[%c0_4, %c0_5] : memref<8x1xf32, #tpu.memory_space<vmem>>, vector<8x1xf32>
    %7 = vector.broadcast %6 : vector<8x1xf32> to vector<8x384xf32>
    %8 = arith.addf %5, %7 : vector<8x384xf32>
    %cst = arith.constant 0.000000e+00 : f32
    %9 = vector.broadcast %cst : f32 to vector<8x384xf32>
    %10 = arith.maximumf %8, %9 : vector<8x384xf32>
    %11 = vector.extract_strided_slice %10 {offsets = [0, 0], sizes = [8, 16], strides = [1, 1]} : vector<8x384xf32> to vector<8x16xf32>
    %c0_6 = arith.constant 0 : index
    %c0_7 = arith.constant 0 : index
    %c0_8 = arith.constant 0 : index
    %c0_9 = arith.constant 0 : index
    %12 = vector.load %arg4[%c0_6, %c0_7, %c0_8, %c0_9] : memref<1x8x16x16xf32, #tpu.memory_space<vmem>>, vector<1x8x1x16xf32>
    %13 = vector.shape_cast %12 : vector<1x8x1x16xf32> to vector<8x16xf32>
    %14 = vector.shape_cast %11 : vector<8x16xf32> to vector<1x8x1x16xf32>
    tpu.vector_store %arg4[%c0_6, %c0_7, %c0_8, %c0_9], %14 {strides = array<i32>} : memref<1x8x16x16xf32, #tpu.memory_space<vmem>>, vector<1x8x1x16xf32>,
    %15 = vector.extract_strided_slice %10 {offsets = [0, 18], sizes = [8, 16], strides = [1, 1]} : vector<8x384xf32> to vector<8x16xf32>
    %c0_10 = arith.constant 0 : index
    %c0_11 = arith.constant 0 : index
    %c1 = arith.constant 1 : index
    %c0_12 = arith.constant 0 : index
    %16 = vector.load %arg4[%c0_10, %c0_11, %c1, %c0_12] : memref<1x8x16x16xf32, #tpu.memory_space<vmem>>, vector<1x8x1x16xf32>
    %17 = vector.shape_cast %16 : vector<1x8x1x16xf32> to vector<8x16xf32>
    %18 = vector.shape_cast %15 : vector<8x16xf32> to vector<1x8x1x16xf32>
    tpu.vector_store %arg4[%c0_10, %c0_11, %c1, %c0_12], %18 {strides = array<i32>} : memref<1x8x16x16xf32, #tpu.memory_space<vmem>>, vector<1x8x1x16xf32>,
    %19 = vector.extract_strided_slice %10 {offsets = [0, 36], sizes = [8, 16], strides = [1, 1]} : vector<8x384xf32> to vector<8x16xf32>
    %c0_13 = arith.constant 0 : index
    %c0_14 = arith.constant 0 : index
    %c2 = arith.constant 2 : index
    %c0_15 = arith.constant 0 : index
    %20 = vector.load %arg4[%c0_13, %c0_14, %c2, %c0_15] : memref<1x8x16x16xf32, #tpu.memory_space<vmem>>, vector<1x8x1x16xf32>
    %21 = vector.shape_cast %20 : vector<1x8x1x16xf32> to vector<8x16xf32>
    %22 = vector.shape_cast %19 : vector<8x16xf32> to vector<1x8x1x16xf32>
    tpu.vector_store %arg4[%c0_13, %c0_14, %c2, %c0_15], %22 {strides = array<i32>} : memref<1x8x16x16xf32, #tpu.memory_space<vmem>>, vector<1x8x1x16xf32>,
    %23 = vector.extract_strided_slice %10 {offsets = [0, 54], sizes = [8, 16], strides = [1, 1]} : vector<8x384xf32> to vector<8x16xf32>
    %c0_16 = arith.constant 0 : index
    %c0_17 = arith.constant 0 : index
    %c3 = arith.constant 3 : index
    %c0_18 = arith.constant 0 : index
    %24 = vector.load %arg4[%c0_16, %c0_17, %c3, %c0_18] : memref<1x8x16x16xf32, #tpu.memory_space<vmem>>, vector<1x8x1x16xf32>
    %25 = vector.shape_cast %24 : vector<1x8x1x16xf32> to vector<8x16xf32>
    %26 = vector.shape_cast %23 : vector<8x16xf32> to vector<1x8x1x16xf32>
    tpu.vector_store %arg4[%c0_16, %c0_17, %c3, %c0_18], %26 {strides = array<i32>} : memref<1x8x16x16xf32, #tpu.memory_space<vmem>>, vector<1x8x1x16xf32>,
    %27 = vector.extract_strided_slice %10 {offsets = [0, 72], sizes = [8, 16], strides = [1, 1]} : vector<8x384xf32> to vector<8x16xf32>
    %c0_19 = arith.constant 0 : index
    %c0_20 = arith.constant 0 : index
    %c4 = arith.constant 4 : index
    %c0_21 = arith.constant 0 : index
    %28 = vector.load %arg4[%c0_19, %c0_20, %c4, %c0_21] : memref<1x8x16x16xf32, #tpu.memory_space<vmem>>, vector<1x8x1x16xf32>
    %29 = vector.shape_cast %28 : vector<1x8x1x16xf32> to vector<8x16xf32>
    %30 = vector.shape_cast %27 : vector<8x16xf32> to vector<1x8x1x16xf32>
    tpu.vector_store %arg4[%c0_19, %c0_20, %c4, %c0_21], %30 {strides = array<i32>} : memref<1x8x16x16xf32, #tpu.memory_space<vmem>>, vector<1x8x1x16xf32>,
    %31 = vector.extract_strided_slice %10 {offsets = [0, 90], sizes = [8, 16], strides = [1, 1]} : vector<8x384xf32> to vector<8x16xf32>
    %c0_22 = arith.constant 0 : index
    %c0_23 = arith.constant 0 : index
    %c5 = arith.constant 5 : index
    %c0_24 = arith.constant 0 : index
    %32 = vector.load %arg4[%c0_22, %c0_23, %c5, %c0_24] : memref<1x8x16x16xf32, #tpu.memory_space<vmem>>, vector<1x8x1x16xf32>
    %33 = vector.shape_cast %32 : vector<1x8x1x16xf32> to vector<8x16xf32>
    %34 = vector.shape_cast %31 : vector<8x16xf32> to vector<1x8x1x16xf32>
    tpu.vector_store %arg4[%c0_22, %c0_23, %c5, %c0_24], %34 {strides = array<i32>} : memref<1x8x16x16xf32, #tpu.memory_space<vmem>>, vector<1x8x1x16xf32>,
    %35 = vector.extract_strided_slice %10 {offsets = [0, 108], sizes = [8, 16], strides = [1, 1]} : vector<8x384xf32> to vector<8x16xf32>
    %c0_25 = arith.constant 0 : index
    %c0_26 = arith.constant 0 : index
    %c6 = arith.constant 6 : index
    %c0_27 = arith.constant 0 : index
    %36 = vector.load %arg4[%c0_25, %c0_26, %c6, %c0_27] : memref<1x8x16x16xf32, #tpu.memory_space<vmem>>, vector<1x8x1x16xf32>
    %37 = vector.shape_cast %36 : vector<1x8x1x16xf32> to vector<8x16xf32>
    %38 = vector.shape_cast %35 : vector<8x16xf32> to vector<1x8x1x16xf32>
    tpu.vector_store %arg4[%c0_25, %c0_26, %c6, %c0_27], %38 {strides = array<i32>} : memref<1x8x16x16xf32, #tpu.memory_space<vmem>>, vector<1x8x1x16xf32>,
    %39 = vector.extract_strided_slice %10 {offsets = [0, 126], sizes = [8, 16], strides = [1, 1]} : vector<8x384xf32> to vector<8x16xf32>
    %c0_28 = arith.constant 0 : index
    %c0_29 = arith.constant 0 : index
    %c7 = arith.constant 7 : index
    %c0_30 = arith.constant 0 : index
    %40 = vector.load %arg4[%c0_28, %c0_29, %c7, %c0_30] : memref<1x8x16x16xf32, #tpu.memory_space<vmem>>, vector<1x8x1x16xf32>
    %41 = vector.shape_cast %40 : vector<1x8x1x16xf32> to vector<8x16xf32>
    %42 = vector.shape_cast %39 : vector<8x16xf32> to vector<1x8x1x16xf32>
    tpu.vector_store %arg4[%c0_28, %c0_29, %c7, %c0_30], %42 {strides = array<i32>} : memref<1x8x16x16xf32, #tpu.memory_space<vmem>>, vector<1x8x1x16xf32>,
    %43 = vector.extract_strided_slice %10 {offsets = [0, 144], sizes = [8, 16], strides = [1, 1]} : vector<8x384xf32> to vector<8x16xf32>
    %c0_31 = arith.constant 0 : index
    %c0_32 = arith.constant 0 : index
    %c8 = arith.constant 8 : index
    %c0_33 = arith.constant 0 : index
    %44 = vector.load %arg4[%c0_31, %c0_32, %c8, %c0_33] : memref<1x8x16x16xf32, #tpu.memory_space<vmem>>, vector<1x8x1x16xf32>
    %45 = vector.shape_cast %44 : vector<1x8x1x16xf32> to vector<8x16xf32>
    %46 = vector.shape_cast %43 : vector<8x16xf32> to vector<1x8x1x16xf32>
    tpu.vector_store %arg4[%c0_31, %c0_32, %c8, %c0_33], %46 {strides = array<i32>} : memref<1x8x16x16xf32, #tpu.memory_space<vmem>>, vector<1x8x1x16xf32>,
    %47 = vector.extract_strided_slice %10 {offsets = [0, 162], sizes = [8, 16], strides = [1, 1]} : vector<8x384xf32> to vector<8x16xf32>
    %c0_34 = arith.constant 0 : index
    %c0_35 = arith.constant 0 : index
    %c9 = arith.constant 9 : index
    %c0_36 = arith.constant 0 : index
    %48 = vector.load %arg4[%c0_34, %c0_35, %c9, %c0_36] : memref<1x8x16x16xf32, #tpu.memory_space<vmem>>, vector<1x8x1x16xf32>
    %49 = vector.shape_cast %48 : vector<1x8x1x16xf32> to vector<8x16xf32>
    %50 = vector.shape_cast %47 : vector<8x16xf32> to vector<1x8x1x16xf32>
    tpu.vector_store %arg4[%c0_34, %c0_35, %c9, %c0_36], %50 {strides = array<i32>} : memref<1x8x16x16xf32, #tpu.memory_space<vmem>>, vector<1x8x1x16xf32>,
    %51 = vector.extract_strided_slice %10 {offsets = [0, 180], sizes = [8, 16], strides = [1, 1]} : vector<8x384xf32> to vector<8x16xf32>
    %c0_37 = arith.constant 0 : index
    %c0_38 = arith.constant 0 : index
    %c10 = arith.constant 10 : index
    %c0_39 = arith.constant 0 : index
    %52 = vector.load %arg4[%c0_37, %c0_38, %c10, %c0_39] : memref<1x8x16x16xf32, #tpu.memory_space<vmem>>, vector<1x8x1x16xf32>
    %53 = vector.shape_cast %52 : vector<1x8x1x16xf32> to vector<8x16xf32>
    %54 = vector.shape_cast %51 : vector<8x16xf32> to vector<1x8x1x16xf32>
    tpu.vector_store %arg4[%c0_37, %c0_38, %c10, %c0_39], %54 {strides = array<i32>} : memref<1x8x16x16xf32, #tpu.memory_space<vmem>>, vector<1x8x1x16xf32>,
    %55 = vector.extract_strided_slice %10 {offsets = [0, 198], sizes = [8, 16], strides = [1, 1]} : vector<8x384xf32> to vector<8x16xf32>
    %c0_40 = arith.constant 0 : index
    %c0_41 = arith.constant 0 : index
    %c11 = arith.constant 11 : index
    %c0_42 = arith.constant 0 : index
    %56 = vector.load %arg4[%c0_40, %c0_41, %c11, %c0_42] : memref<1x8x16x16xf32, #tpu.memory_space<vmem>>, vector<1x8x1x16xf32>
    %57 = vector.shape_cast %56 : vector<1x8x1x16xf32> to vector<8x16xf32>
    %58 = vector.shape_cast %55 : vector<8x16xf32> to vector<1x8x1x16xf32>
    tpu.vector_store %arg4[%c0_40, %c0_41, %c11, %c0_42], %58 {strides = array<i32>} : memref<1x8x16x16xf32, #tpu.memory_space<vmem>>, vector<1x8x1x16xf32>,
    %59 = vector.extract_strided_slice %10 {offsets = [0, 216], sizes = [8, 16], strides = [1, 1]} : vector<8x384xf32> to vector<8x16xf32>
    %c0_43 = arith.constant 0 : index
    %c0_44 = arith.constant 0 : index
    %c12 = arith.constant 12 : index
    %c0_45 = arith.constant 0 : index
    %60 = vector.load %arg4[%c0_43, %c0_44, %c12, %c0_45] : memref<1x8x16x16xf32, #tpu.memory_space<vmem>>, vector<1x8x1x16xf32>
    %61 = vector.shape_cast %60 : vector<1x8x1x16xf32> to vector<8x16xf32>
    %62 = vector.shape_cast %59 : vector<8x16xf32> to vector<1x8x1x16xf32>
    tpu.vector_store %arg4[%c0_43, %c0_44, %c12, %c0_45], %62 {strides = array<i32>} : memref<1x8x16x16xf32, #tpu.memory_space<vmem>>, vector<1x8x1x16xf32>,
    %63 = vector.extract_strided_slice %10 {offsets = [0, 234], sizes = [8, 16], strides = [1, 1]} : vector<8x384xf32> to vector<8x16xf32>
    %c0_46 = arith.constant 0 : index
    %c0_47 = arith.constant 0 : index
    %c13 = arith.constant 13 : index
    %c0_48 = arith.constant 0 : index
    %64 = vector.load %arg4[%c0_46, %c0_47, %c13, %c0_48] : memref<1x8x16x16xf32, #tpu.memory_space<vmem>>, vector<1x8x1x16xf32>
    %65 = vector.shape_cast %64 : vector<1x8x1x16xf32> to vector<8x16xf32>
    %66 = vector.shape_cast %63 : vector<8x16xf32> to vector<1x8x1x16xf32>
    tpu.vector_store %arg4[%c0_46, %c0_47, %c13, %c0_48], %66 {strides = array<i32>} : memref<1x8x16x16xf32, #tpu.memory_space<vmem>>, vector<1x8x1x16xf32>,
    %67 = vector.extract_strided_slice %10 {offsets = [0, 252], sizes = [8, 16], strides = [1, 1]} : vector<8x384xf32> to vector<8x16xf32>
    %c0_49 = arith.constant 0 : index
    %c0_50 = arith.constant 0 : index
    %c14 = arith.constant 14 : index
    %c0_51 = arith.constant 0 : index
    %68 = vector.load %arg4[%c0_49, %c0_50, %c14, %c0_51] : memref<1x8x16x16xf32, #tpu.memory_space<vmem>>, vector<1x8x1x16xf32>
    %69 = vector.shape_cast %68 : vector<1x8x1x16xf32> to vector<8x16xf32>
    %70 = vector.shape_cast %67 : vector<8x16xf32> to vector<1x8x1x16xf32>
    tpu.vector_store %arg4[%c0_49, %c0_50, %c14, %c0_51], %70 {strides = array<i32>} : memref<1x8x16x16xf32, #tpu.memory_space<vmem>>, vector<1x8x1x16xf32>,
    %71 = vector.extract_strided_slice %10 {offsets = [0, 270], sizes = [8, 16], strides = [1, 1]} : vector<8x384xf32> to vector<8x16xf32>
    %c0_52 = arith.constant 0 : index
    %c0_53 = arith.constant 0 : index
    %c15 = arith.constant 15 : index
    %c0_54 = arith.constant 0 : index
    %72 = vector.load %arg4[%c0_52, %c0_53, %c15, %c0_54] : memref<1x8x16x16xf32, #tpu.memory_space<vmem>>, vector<1x8x1x16xf32>
    %73 = vector.shape_cast %72 : vector<1x8x1x16xf32> to vector<8x16xf32>
    %74 = vector.shape_cast %71 : vector<8x16xf32> to vector<1x8x1x16xf32>
    tpu.vector_store %arg4[%c0_52, %c0_53, %c15, %c0_54], %74 {strides = array<i32>} : memref<1x8x16x16xf32, #tpu.memory_space<vmem>>, vector<1x8x1x16xf32>,
    return
  }
  func.func @transform_0(%arg0: i32) -> (i32, i32, i32) {
    %c0_i32 = arith.constant 0 : i32
    %c0_i32_0 = arith.constant 0 : i32
    %c0_i32_1 = arith.constant 0 : i32
    return %arg0, %c0_i32, %c0_i32_0 : i32, i32, i32
  }
  func.func @transform_1(%arg0: i32) -> (i32, i32) {
    %c0_i32 = arith.constant 0 : i32
    %c0_i32_0 = arith.constant 0 : i32
    %c0_i32_1 = arith.constant 0 : i32
    return %c0_i32, %c0_i32_0 : i32, i32
  }
  func.func @transform_2(%arg0: i32) -> (i32, i32) {
    %c0_i32 = arith.constant 0 : i32
    %c0_i32_0 = arith.constant 0 : i32
    %c0_i32_1 = arith.constant 0 : i32
    return %c0_i32, %c0_i32_0 : i32, i32
  }
  func.func @transform_3(%arg0: i32) -> (i32, i32, i32, i32) {
    %c0_i32 = arith.constant 0 : i32
    %c0_i32_0 = arith.constant 0 : i32
    %c0_i32_1 = arith.constant 0 : i32
    %c0_i32_2 = arith.constant 0 : i32
    return %arg0, %c0_i32, %c0_i32_0, %c0_i32_1 : i32, i32, i32, i32
  }
}

</mosaic_0001>

<bundles_post_ra>
// kernel: conv_block_forward.2
= control target key start
LH: loop header
LB: loop body
LE: loop exit
PB: predicated region body
PF: predicated region fallthrough
CT: control target
= control target key end

     0   :  { %s984_s18 = smov 0   ;;  %s986_s19 = smov 0   ;;  %s1117_s0 = inlined_call_operand.vmem [shape: bf16[2,1,4,512], index: 0, kind: input, shape index: {}]   ;;  %s1118_s1 = inlined_call_operand.vmem [shape: bf16[8,36], index: 1, kind: input, shape index: {}]   ;;  %s1119_s2 = inlined_call_operand.vmem [shape: f32[1,384], index: 2, kind: input, shape index: {}]   ;;  %s1120_s3 = inlined_call_operand.vmem [shape: bf16[2,8,384], index: 3, kind: output, shape index: {0}]   ;;  %s1121_s4 = inlined_call_operand.vmem [shape: f32[2,1,8,1], index: 4, kind: output, shape index: {1}]   ;;  %s1122_s5 = inlined_call_operand.vmem [shape: f32[2,1,8,1], index: 5, kind: output, shape index: {2}]  }
   0x1   :  { %s988_s20 = smov 0  }
   0x2 LB: > { %s28_s21 = sadd.s32 1, %s936_s19  ;;  %p848_p0 = scmp.ge.s32.totalorder %s940_s20, 1  ;;  %s940_s20 = sphi %s988_s20, %s16_s20   ;;  %s936_s19 = sphi %s986_s19, %s1124_s19   ;;  %s932_s18 = sphi %s984_s18, %s1123_s18  }
   0x3   : > { %p30_p1 = scmp.ge.s32.totalorder %s28_s21, 2  ;;  %p226_p2 = scmp.lt.s32.totalorder %s940_s20, 3 }
   0x5   : > { %s1126_s21 = smov (%p30_p1, %s28_s21), 0  ;;  %p227_p3 = pnand %p848_p0, %p226_p2 }
   0x6   : > { %p280_p4 = scmp.lt.s32.totalorder (!%p227_p3), %s932_s18, 1  ;;  %s943_s26 = smov (!%p227_p3), 90  }
   0x7   : > { %230 = sbr.rel (%p227_p3) target bundleno = 540 (0x21c), region = 32  ;;  %s944_s27 = smov (!%p227_p3), 109  }
   0x8   : > { %s945_s28 = smov (!%p227_p3), 108   ;;  %s946_s29 = smov (!%p227_p3), 92  }
   0x9   : > { %s948_s30 = smov (!%p227_p3), 91   ;;  %s949_s6 = smov (!%p227_p3), 127  }
   0xa   : > { %s950_s7 = smov (!%p227_p3), 126   ;;  %s952_s8 = smov (!%p227_p3), 110  }
   0xc   : > { %v326_v0 = vlaneseq  ;;  %v942_v1 = vmov 1983009808   ;;  %s1128_s18 = smov (!%p280_p4, %s932_s18), 1  ;;  %v947_v17 = vmov 0.0   ;;  %v951_v23 = vmov 0  }
   0xd   : > { %v324_v2 = vunpack.c.l.s4 %v942_v1  ;;  %s1007_s22 = sshll.u32 %s1128_s18, 3  ;;  %868 = vmatprep.subr.bf16.mxu1 %v947_v17  ;;  %561 = vmatprep.mubr.bf16.mxu0 %v951_v23  ;;  %vm953_vm0 = vmmov 0   ;;  %vm460_vm1 = vcmask 736256   ;;  %vm464_vm2 = vcmask 1041408   ;;  %s878_s13 = smul.u32 12, %s1128_s18 }
   0xe   : > { %v1004_v3 = vshrl.u32 %v326_v0, 7  ;;  %s288_s25 = scalar_lea.vmem %s1117_s0, %s1007_s22  ;;  %874 = vmatprep.mubr.msk.bf16.mxu1 %vm953_vm0, %v947_v17  ;;  %vm424_vm3 = vcmask 883712   ;;  %vm436_vm4 = vcmask 752640   ;;  %vm412_vm5 = vcmask 891904   ;;  %s310_s23 = scalar_lea.vmem %s1121_s4, %s1007_s22 }
   0xf   : > { %v325_v4 = vunpack.c.0.s8 %v324_v2  ;;  %v320_v6 = vld [vmem:[%s288_s25] sm:$0xff]  ;;  %vm448_vm6 = vcmask 744448   ;;  %vm474_vm7 = vcmask 1043456   ;;  %vm481_vm8 = vcmask 1045504   ;;  %s302_s16 = scalar_lea.vmem %s1120_s3, %s878_s13 }
  0x10   : > { %v368_v8 = vcombine.high %v320_v6, %v320_v6  ;;  %v339_v11 = vcombine.low %v320_v6, %v320_v6  ;;  %v319_v15 = vld [vmem:[%s288_s25] sm:$0x3f]  ;;  %vm364_vm9 = vcmask 1039360   ;;  %vm386_vm10 = vcmask 1031168  }
  0x11   : > { %v328_v5 = vsub.s32 %v325_v4, %v1004_v3  ;;  %v322_v21 = vcombine.high %v319_v15, %v319_v15  ;;  %vm399_vm11 = vcmask 900096   ;;  %vm516_vm12 = vcmask 293888  }
  0x12   : > { %vm649_vm13 = vcmask 7168  }
  0x13   : > { %v353_v7 = vrot.slane %v320_v6, %v328_v5  ;;  %v375_v9 = vrot.slane %v368_v8, %v328_v5  ;;  %v346_v12 = vrot.slane %v339_v11, %v328_v5  ;;  %v1022_v18 = vrot.slane %v319_v15, %v328_v5 }
  0x14   : > { %v1028_v22 = vrot.slane %v322_v21, %v328_v5 }
  0x15   : > { %452 = vrot.lane.b32.xlu0 %v353_v7, %s943_s26  ;;  %v355_v10 = vcombine.high %v353_v7, %v353_v7  ;;  %456 = vrot.lane.b32.xlu1 %v375_v9, %s943_s26  ;;  %v354_v13 = vcombine.high %v346_v12, %v346_v12  ;;  %v377_v14 = vcombine.low %v375_v9, %v375_v9 }
  0x16   : > { %v376_v16 = vcombine.low %v353_v7, %v353_v7  ;;  %v390_v19 = vcombine.low %v346_v12, %v346_v12  ;;  %v403_v20 = vcombine.high %v375_v9, %v375_v9  ;;  %v337_v2 = vcombine.high %v1022_v18, %v1022_v18 }
  0x19   : > { %454 = vrot.lane.b32.xlu0 %v355_v10, %s943_s26  ;;  %406 = vrot.lane.b32.xlu1 %v355_v10, %s944_s27 }
  0x1d   : > { %408 = vrot.lane.b32.xlu0 %v375_v9, %s944_s27  ;;  %404 = vrot.lane.b32.xlu1 %v353_v7, %s944_s27 }
  0x21   : > { %420 = vrot.lane.b32.xlu0 %v353_v7, %s945_s28  ;;  %418 = vrot.lane.b32.xlu1 %v354_v13, %s945_s28 }
  0x25   : > { %416 = vrot.lane.b32.xlu0 %v346_v12, %s945_s28  ;;  %430 = vrot.lane.b32.xlu1 %v353_v7, %s946_s29 }
  0x29   : > { %432 = vrot.lane.b32.xlu0 %v377_v14, %s946_s29  ;;  %428 = vrot.lane.b32.xlu1 %v376_v16, %s946_s29 }
  0x2d   : > { %442 = vrot.lane.b32.xlu0 %v346_v12, %s948_s30  ;;  %444 = vrot.lane.b32.xlu1 %v376_v16, %s948_s30 }
  0x31   : > { %440 = vrot.lane.b32.xlu0 %v390_v19, %s948_s30  ;;  %458 = vrot.lane.b32.xlu1 %v403_v20, %s943_s26  ;;  %s317_s26 = scalar_lea.vmem %s1122_s5, %s1007_s22 }
  0x35   : > { %358 = vrot.lane.b32.xlu0 %v354_v13, %s949_s6  ;;  %360 = vrot.lane.b32.xlu1 %v353_v7, %s949_s6 }
  0x39   : > { %356 = vrot.lane.b32.xlu0 %v346_v12, %s949_s6  ;;  %380 = vrot.lane.b32.xlu1 %v353_v7, %s950_s7 }
  0x3d   : > { %382 = vrot.lane.b32.xlu0 %v377_v14, %s950_s7  ;;  %410 = vrot.lane.b32.xlu1 %v403_v20, %s944_s27 }
  0x41   : > { %422 = vrot.lane.b32.xlu0 %v355_v10, %s945_s28  ;;  %378 = vrot.lane.b32.xlu1 %v376_v16, %s950_s7 }
  0x45   : > { %393 = vrot.lane.b32.xlu0 %v346_v12, %s952_s8  ;;  %395 = vrot.lane.b32.xlu1 %v376_v16, %s952_s8 }
  0x49   : > { %434 = vrot.lane.b32.xlu0 %v375_v9, %s946_s29  ;;  %391 = vrot.lane.b32.xlu1 %v390_v19, %s952_s8 }
  0x4d   : > { %446 = vrot.lane.b32.xlu0 %v353_v7, %s948_s30  ;;  %362 = vrot.lane.b32.xlu1 %v355_v10, %s949_s6 }
  0x51   : > { %384 = vrot.lane.b32.xlu0 %v375_v9, %s950_s7  ;;  %397 = vrot.lane.b32.xlu1 %v353_v7, %s952_s8 }
  0x87   : > { %v453_v24 = vpop.permute.xlu0 %452  ;;  %v457_v25 = vpop.permute.xlu1 %456 }
  0x8b   : > { %v455_v26 = vpop.permute.xlu0 %454  ;;  %v407_v29 = vpop.permute.xlu1 %406 }
  0x8c   : > { %v462_v27 = vsel %vm460_vm1, %v455_v26, %v457_v25  ;;  %v461_v28 = vsel %vm460_vm1, %v453_v24, %v455_v26 }
  0x8d   : > { %854 = vmatprep.subr.msk.bf16.mxu0 %vm464_vm2, %v462_v27  ;;  %v521_v30 = vsel %vm464_vm2, %v461_v28, 0 }
  0x8e   : > { %540 = vmatpush1.bf16.msra.mxu0 %v521_v30  ;;  %v515_v30 = vld [vmem:[%s1118_s1] sm:$0xf] }
  0x8f   : > { %v1036_v31 = vpop.permute.xlu0 %408  ;;  %v405_v32 = vpop.permute.xlu1 %404 }
  0x90   : > { %v414_v42 = vsel %vm412_vm5, %v407_v29, %v1036_v31  ;;  %v413_v47 = vsel %vm412_vm5, %v405_v32, %v407_v29 }
  0x93   : > { %v421_v33 = vpop.permute.xlu0 %420  ;;  %v419_v34 = vpop.permute.xlu1 %418 }
  0x94   : > { %v426_v39 = vsel %vm424_vm3, %v419_v34, %v421_v33 }
  0x95   : > { %v496_v44 = vsel %vm464_vm2, %v414_v42, %v426_v39  ;;  %v633_v42 = vsub.s32 1, %v1004_v3 }
  0x97   : > { %v417_v35 = vpop.permute.xlu0 %416  ;;  %v431_v36 = vpop.permute.xlu1 %430 }
  0x98   : > { %v425_v43 = vsel %vm424_vm3, %v417_v35, %v419_v34 }
  0x99   : > { %v493_v50 = vsel %vm464_vm2, %v413_v47, %v425_v43 }
  0x9b   : > { %v433_v37 = vpop.permute.xlu0 %432  ;;  %v429_v38 = vpop.permute.xlu1 %428 }
  0x9c   : > { %v438_v40 = vsel %vm436_vm4, %v431_v36, %v433_v37  ;;  %v437_v45 = vsel %vm436_vm4, %v429_v38, %v431_v36 }
  0x9d   : > { %v503_v49 = vsel %vm474_vm7, %v496_v44, %v438_v40  ;;  %v501_v54 = vsel %vm474_vm7, %v493_v50, %v437_v45  ;;  %v637_v45 = vsub.s32 2, %v1004_v3 }
  0x9f   : > { %v443_v41 = vpop.permute.xlu0 %442  ;;  %v445_v46 = vpop.permute.xlu1 %444 }
  0xa0   : > { %v450_v48 = vsel %vm448_vm6, %v443_v41, %v445_v46 }
  0xa1   : > { %v510_v52 = vsel %vm481_vm8, %v503_v49, %v450_v48 }
  0xa2   : > { %541 = vmatprep.subr.bf16.mxu0 %v510_v52 }
  0xa3   : > { %v441_v51 = vpop.permute.xlu0 %440  ;;  %v459_v55 = vpop.permute.xlu1 %458 }
  0xa4   : > { %v449_v53 = vsel %vm448_vm6, %v441_v51, %v443_v41  ;;  %v463_v57 = vsel %vm460_vm1, %v457_v25, %v459_v55  ;;  %v629_v41 = vsub.s32 0, %v1004_v3 }
  0xa5   : > { %v507_v56 = vsel %vm481_vm8, %v501_v54, %v449_v53  ;;  %v527_v59 = vsel %vm464_vm2, %v463_v57, 0 }
  0xa6   : > { %542 = vmatpush1.bf16.msra.mxu0 %v507_v56  ;;  %869 = vmatpush3.bf16.msra.mxu1 %v527_v59 }
  0xa7   : > { %v359_v58 = vpop.permute.xlu0 %358  ;;  %v361_v60 = vpop.permute.xlu1 %360  ;;  %870 = vmatprep.subr.bf16.mxu1 %v947_v17 }
  0xa8   : > { %v366_v5 = vsel %vm364_vm9, %v359_v58, %v361_v60 }
  0xa9   : > { %v470_v8 = vsel %vm464_vm2, %v337_v2, %v366_v5 }
  0xab   : > { %v357_v61 = vpop.permute.xlu0 %356  ;;  %v381_v62 = vpop.permute.xlu1 %380 }
  0xac   : > { %v365_v10 = vsel %vm364_vm9, %v357_v61, %v359_v58 }
  0xad   : > { %v467_v19 = vsel %vm464_vm2, %v1022_v18, %v365_v10 }
  0xaf   : > { %v383_v63 = vpop.permute.xlu0 %382  ;;  %v411_v0 = vpop.permute.xlu1 %410 }
  0xb0   : > { %v388_v6 = vsel %vm386_vm10, %v381_v62, %v383_v63  ;;  %v415_v23 = vsel %vm412_vm5, %v1036_v31, %v411_v0 }
  0xb1   : > { %v478_v12 = vsel %vm474_vm7, %v470_v8, %v388_v6 }
  0xb3   : > { %v423_v1 = vpop.permute.xlu0 %422  ;;  %v379_v4 = vpop.permute.xlu1 %378 }
  0xb4   : > { %v387_v13 = vsel %vm386_vm10, %v379_v4, %v381_v62  ;;  %v427_v16 = vsel %vm424_vm3, %v421_v33, %v423_v1 }
  0xb5   : > { %v476_v25 = vsel %vm474_vm7, %v467_v19, %v387_v13  ;;  %v499_v26 = vsel %vm464_vm2, %v415_v23, %v427_v16 }
  0xb7   : > { %v394_v7 = vpop.permute.xlu0 %393  ;;  %v396_v9 = vpop.permute.xlu1 %395 }
  0xb8   : > { %v401_v11 = vsel %vm399_vm11, %v394_v7, %v396_v9 }
  0xb9   : > { %v486_v15 = vsel %vm481_vm8, %v478_v12, %v401_v11 }
  0xba   : > { %543 = vmatprep.subr.bf16.mxu0 %v486_v15 }
  0xbb   : > { %v435_v14 = vpop.permute.xlu0 %434  ;;  %v392_v21 = vpop.permute.xlu1 %391 }
  0xbc   : > { %v439_v20 = vsel %vm436_vm4, %v433_v37, %v435_v14  ;;  %v400_v24 = vsel %vm399_vm11, %v392_v21, %v394_v7 }
  0xbd   : > { %v483_v28 = vsel %vm481_vm8, %v476_v25, %v400_v24  ;;  %v505_v18 = vsel %vm474_vm7, %v499_v26, %v439_v20 }
  0xbe   : > { %544 = vmatpush1.bf16.msra.mxu0 %v483_v28 }
  0xbf   : > { %v447_v27 = vpop.permute.xlu0 %446  ;;  %v363_v31 = vpop.permute.xlu1 %362 }
  0xc0   : > { %v451_v29 = vsel %vm448_vm6, %v445_v46, %v447_v27  ;;  %v367_v33 = vsel %vm364_vm9, %v361_v60, %v363_v31 }
  0xc1   : > { %v513_v32 = vsel %vm481_vm8, %v505_v18, %v451_v29  ;;  %v473_v34 = vsel %vm464_vm2, %v1028_v22, %v367_v33  ;;  %855 = vmatmul.mubr.msk.bf16.vlgmr.msra.gmra.mxu0 %vm516_vm12, %v515_v30  ;;  %v625_v22 = vld [vmem:[%s1119_s2] sm:$0x7] }
  0xc2   : > { %871 = vmatpush3.bf16.msra.mxu1 %v513_v32  ;;  %v634_v43 = vrot.slane %v625_v22, %v633_v42  ;;  %v638_v51 = vrot.slane %v625_v22, %v637_v45 }
  0xc3   : > { %v385_v35 = vpop.permute.xlu0 %384  ;;  %872 = vmatprep.subr.bf16.mxu1 %v947_v17  ;;  %v398_v37 = vpop.permute.xlu1 %397  ;;  %v630_v17 = vrot.slane %v625_v22, %v629_v41 }
  0xc4   : > { %v389_v36 = vsel %vm386_vm10, %v383_v63, %v385_v35  ;;  %v402_v39 = vsel %vm399_vm11, %v396_v9, %v398_v37 }
  0xc5   : > { %v480_v38 = vsel %vm474_vm7, %v473_v34, %v389_v36 }
  0xc6   : > { %v489_v40 = vsel %vm481_vm8, %v480_v38, %v402_v39 }
  0xc7   : > { %873 = vmatpush3.bf16.msra.mxu1 %v489_v40 }
  0xca   : > { %875 = vmatmul.mubr.msk.bf16.vlgmr.msra.gmra.mxu1 %vm516_vm12, %v515_v30 }
 0x181   : > { %v563_v44 = vpop.f32.mrf.mxu0 }
 0x182   : > { %v642_v47 = vmul.f32 %v630_v17, %v563_v44 }
 0x183   : > { %v565_v46 = vpop.f32.mrf.mxu0 }
 0x184   : > { %v862_v48 = vpack.c.bf16 %v565_v46, %v563_v44  ;;  %v643_v49 = vmul.f32 %v634_v43, %v565_v46  ;;  %v651_v53 = vmul.f32 %v642_v47, %v563_v44 }
 0x185   : > { %v567_v50 = vpop.f32.mrf.mxu0 }
 0x186   : > { %623 = vst [vmem:[%s302_s16] sm:$0xff] %v862_v48  ;;  %v652_v54 = vmul.f32 %v643_v49, %v565_v46  ;;  %v645_v3 = vadd.f32 %v643_v49, %v642_v47 }
 0x187   : > { %v568_v52 = vpop.f32.mrf.mxu0 }
 0x188   : > { %v654_v61 = vadd.f32 %v652_v54, %v651_v53 }
 0x18a   : > { %v604_v55 = vpop.f32.mrf.mxu1 }
 0x18b   : > { %v863_v56 = vpack.c.bf16 %v604_v55, %v604_v55  ;;  %v644_v57 = vmul.f32 %v638_v51, %v604_v55 }
 0x18c   : > { %v876_v58 = vpop.f32.mrf.mxu1 }
 0x18d   : > { %624 = vst [vmem:[%s302_s16 + $0x8] sm:$0xf] %v863_v56  ;;  %v646_v59 = vadd.f32 %v645_v3, %v644_v57  ;;  %v653_v60 = vmul.f32 %v644_v57, %v604_v55 }
 0x18e   : > { %v607_v62 = vpop.f32.mrf.mxu1 }
 0x18f   : > { %647 = vadd.xlane.f32.xlu0 %v646_v59  ;;  %v655_v63 = vadd.f32 %v654_v61, %v653_v60 }
 0x190   : > { %v877_v0 = vpop.f32.mrf.mxu1 }
 0x191   : > { %656 = vadd.xlane.f32.xlu1 %v655_v63 }
 0x218   : > { %v648_v1 = vpop.xlane.xlu0 %647 }
 0x219   : > { %650 = vst.msk [vmem:[%s310_s23] sm:$0xff] %vm649_vm13, %v648_v1 }
 0x21a   : > { %v657_v2 = vpop.xlane.xlu1 %656 }
 0x21b   : > { %658 = vst.msk [vmem:[%s317_s26] sm:$0xff] %vm649_vm13, %v657_v2 }
 0x21c PF: > { %s16_s20 = sadd.s32 1, %s940_s20   ;;  %s1123_s18 = smov %s936_s19 }
 0x21d   : > { %p13_p5 = scmp.ge.s32.totalorder %s16_s20, 4   ;;  %s1124_s19 = smov %s1126_s21 }
 0x21f   :  { %15 = sbr.rel (!%p13_p5) target bundleno = 2 (0x2), region = 89 }

// kernel: conv_block_forward.3
= control target key start
LH: loop header
LB: loop body
LE: loop exit
PB: predicated region body
PF: predicated region fallthrough
CT: control target
= control target key end

     0   :  { %8 = vsyncpa [#allocation3], 0  ;;  %s2436_s0 = inlined_call_operand.vmem [shape: bf16[2,8,384], index: 0, kind: input, shape index: {}]   ;;  %s2437_s1 = inlined_call_operand.vmem [shape: f32[8,1], index: 1, kind: input, shape index: {}]   ;;  %s2438_s2 = inlined_call_operand.vmem [shape: f32[8,1], index: 2, kind: input, shape index: {}]   ;;  %s2439_s3 = inlined_call_operand.hbm [shape: f32[2,8,16,16], index: 3, kind: output, shape index: {}]  }
   0x1   :  { %10 = vsyncpa [#allocation3 + $0x1], 0  ;;  %s1466_s12 = smov 0   ;;  %s1468_s13 = smov 0  }
   0x2   :  { %s1470_s14 = smov 0   ;;  %s1472_s15 = smov 0  }
   0x3 LB: > { %s1487_s16 = sadd.s32 4294967295, %s1424_s15   ;;  %s1292_s17 = sadd.s32 4294967294, %s1424_s15   ;;  %s1424_s15 = sphi %s1472_s15, %s2454_s15   ;;  %s1420_s14 = sphi %s1470_s14, %s2453_s14   ;;  %s1416_s13 = sphi %s1468_s13, %s2452_s13   ;;  %s1412_s12 = sphi %s1466_s12, %s2451_s12  }
   0x4   : > { %s1491_s18 = sadd.s32 1, %s1424_s15   ;;  %s91_s19 = sadd.s32 1, %s1420_s14 }
   0x5   : > { %s88_s20 = ssub.s32 %s1424_s15, %s1491_s18  ;;  %p101_p0 = scmp.ne.s32.totalorder %s1420_s14, %s1416_s13 }
   0x6   : > { %p89_p1 = scmp.eq.s32.totalorder %s88_s20, 0  ;;  %p102_p2 = scmp.eq.s32.totalorder %s1487_s16, 1 }
   0x7   : > { %p107_p3 = scmp.ne.s32.totalorder %s1416_s13, %s1412_s12  ;;  %p108_p4 = scmp.eq.s32.totalorder %s1292_s17, 1 }
   0x8   : > { %s1502_s21 = scalar_select %p89_p1, %s1420_s14, %s91_s19  }
   0x9   : > { %p1504_p5 = por %p102_p2, %p101_p0  ;;  %p1508_p6 = por %p108_p4, %p107_p3 }
   0xa   : > { %p1295_p7 = scmp.ge.s32.totalorder %s1424_s15, 1  ;;  %p140_p8 = scmp.lt.s32.totalorder %s1424_s15, 3 }
   0xc   : > { %p141_p9 = pnand %p1295_p7, %p140_p8 }
   0xd   : > { %p164_p10 = scmp.lt.s32.totalorder (!%p141_p9), %s1487_s16, 1  ;;  %s161_s6 = sand.u32 (!%p141_p9), 1, %s1416_s13  }
   0xe   : > { %144 = sbr.rel (%p141_p9) target bundleno = 560 (0x230), region = 32  ;;  %s1296_s7 = sshll.u32 (!%p141_p9), %s161_s6, 7 }
   0xf   : > { %s1555_s8 = scalar_lea.vmem (!%p141_p9), [#allocation2], %s1296_s7  ;;  %s1428_s9 = smov (!%p141_p9), 92  }
  0x10   : > { %s1429_s10 = smov (!%p141_p9), 110   ;;  %s1430_s11 = smov (!%p141_p9), 74  }
  0x11   : > { %s1431_s17 = smov (!%p141_p9), 56   ;;  %s1432_s19 = smov (!%p141_p9), 38  }
  0x12   : > { %s1433_s20 = smov (!%p141_p9), 20   ;;  %s1434_s24 = smov (!%p141_p9), 112  }
  0x13   : > { %v174_v0 = vld [vmem:[%s2437_s1] sm:$0xff]  ;;  %v1426_v1 = vmov 0   ;;  %s165_s28 = scalar_select %p164_p10, %s1487_s16, 1  ;;  %v1427_v5 = vmov 1966171168   ;;  %v200_v7 = vlaneseq  ;;  %vm253_vm0 = vcmask 122880  }
  0x14   : > { %1363 = vset.pattern.permute.xlu0 %v1426_v1  ;;  %v183_v2 = vld [vmem:[%s2438_s2] sm:$0xff]  ;;  %v198_v6 = vunpack.c.l.s4 %v1427_v5  ;;  %s1435_s25 = smov 2   ;;  %s1436_s26 = smov 94   ;;  %vm633_vm1 = vcmask 15360   ;;  %vm1078_vm2 = vcmask 31744  }
  0x15   : > { %177 = vperm.xlu0 %1363, %v174_v0   ;;  %s1304_s29 = smul.u32 12, %s165_s28  ;;  %v201_v13 = vshrl.u32 %v200_v7, 7  ;;  %s1437_s27 = smov 76  }
  0x16   : > { %v199_v12 = vunpack.c.0.s8 %v198_v6  ;;  %s1438_s28 = smov 58   ;;  %s1440_s30 = smov 22  }
  0x17   : > { %s168_s5 = scalar_lea.vmem %s2436_s0, %s1304_s29  ;;  %v1534_v25 = vsub.s32 0, %v201_v13  ;;  %v1606_v55 = vsub.s32 1, %v201_v13  ;;  %s1439_s29 = smov 40  }
  0x18   : > { %v169_v3 = vld [vmem:[%s168_s5] sm:$0xff]  ;;  %v170_v4 = vld [vmem:[%s168_s5 + $0x8] sm:$0xf]  ;;  %v1526_v18 = vsub.s32 %v199_v12, %v201_v13  ;;  %s1441_s4 = smov 4   ;;  %s1442_s5 = smov 114  }
  0x19   : > { %186 = vperm.xlu0 %1363, %v183_v2   ;;  %v171_v8 = vunpack.c.l.bf16 %v169_v3  ;;  %v172_v9 = vunpack.c.h.bf16 %v169_v3  ;;  %v173_v10 = vunpack.c.l.bf16 %v170_v4  ;;  %s1303_s7 = sshll.u32 %s1487_s16, 11 }
  0x90   : > { %v178_v11 = vpop.permute.xlu0 %177 }
  0x91   : > { %v180_v14 = vmul.f32 %v178_v11, %v171_v8  ;;  %v181_v15 = vmul.f32 %v178_v11, %v172_v9  ;;  %v182_v16 = vmul.f32 %v178_v11, %v173_v10 }
  0x94   : > { %v187_v17 = vpop.permute.xlu0 %186 }
  0x95   : > { %v189_v19 = vadd.f32 %v187_v17, %v180_v14  ;;  %v190_v20 = vadd.f32 %v187_v17, %v181_v15  ;;  %v191_v21 = vadd.f32 %v187_v17, %v182_v16 }
  0x97   : > { %v192_v22 = vmax.f32 %v189_v19, 0.0  ;;  %v1530_v23 = vmax.f32 %v190_v20, 0.0  ;;  %v1532_v24 = vmax.f32 %v191_v21, 0.0 }
  0x99   : > { %v196_v26 = vcombine.high %v192_v22, %v192_v22  ;;  %v203_v27 = vrot.slane %v192_v22, %v1526_v18  ;;  %v932_v28 = vcombine.low %v1530_v23, %v1532_v24  ;;  %v933_v29 = vcombine.high %v1530_v23, %v1532_v24 }
  0x9a   : > { %v665_v30 = vrot.slane %v1530_v23, %v1526_v18  ;;  %v487_v31 = vcombine.low %v192_v22, %v1530_v23  ;;  %v488_v32 = vcombine.high %v192_v22, %v1530_v23  ;;  %v658_v44 = vcombine.high %v1530_v23, %v1530_v23 }
  0x9b   : > { %v210_v33 = vrot.slane %v196_v26, %v1526_v18  ;;  %v211_v34 = vcombine.high %v203_v27, %v203_v27  ;;  %v219_v35 = vrot.slane %v203_v27, %v1526_v18  ;;  %v1548_v36 = vrot.slane %v932_v28, %v1526_v18 }
  0x9c   : > { %v502_v37 = vrot.slane %v488_v32, %v1526_v18  ;;  %v673_v38 = vcombine.high %v665_v30, %v665_v30  ;;  %v495_v46 = vrot.slane %v487_v31, %v1526_v18  ;;  %v1578_v47 = vrot.slane %v665_v30, %v1526_v18 }
  0x9d   : > { %v212_v39 = vcombine.high %v210_v33, %v210_v33  ;;  %v1552_v40 = vrot.slane %v210_v33, %v1526_v18  ;;  %v233_v41 = vrot.slane %v211_v34, %v1526_v18  ;;  %254 = vst.msk [vmem:[%s1555_s8] sm:$0x1] %vm253_vm0, %v219_v35  ;;  %v1560_v42 = vrot.slane %v219_v35, %v1534_v25 }
  0x9e   : > { %v241_v43 = vcombine.high %v219_v35, %v219_v35  ;;  %v1589_v49 = vrot.slane %v502_v37, %v1526_v18  ;;  %v1592_v50 = vrot.slane %v673_v38, %v1526_v18  ;;  %v672_v52 = vrot.slane %v658_v44, %v1526_v18 }
  0x9f   : > { %v1565_v45 = vrot.slane %v212_v39, %v1526_v18  ;;  %255 = vst.msk [vmem:[%s1555_s8 + $0x10] sm:$0x1] %vm253_vm0, %v233_v41  ;;  %258 = vst.msk [vmem:[%s1555_s8 + $0x40] sm:$0x1] %vm253_vm0, %v1552_v40  ;;  %326 = vrot.lane.b32.xlu0 %v1560_v42, %s1428_s9  ;;  %294 = vrot.lane.b32.xlu1 %v1560_v42, %s1429_s10  ;;  %v1586_v48 = vrot.slane %v233_v41, %v1534_v25 }
  0xa0   : > { %256 = vst.msk [vmem:[%s1555_s8 + $0x20] sm:$0x1] %vm253_vm0, %v241_v43  ;;  %v1594_v51 = vcombine.high %v233_v41, %v233_v41  ;;  %v242_v53 = vcombine.high %v1552_v40, %v1552_v40  ;;  %v503_v54 = vcombine.high %v495_v46, %v495_v46  ;;  %v688_v56 = vrot.slane %v672_v52, %v1526_v18 }
  0xa1   : > { %259 = vst.msk [vmem:[%s1555_s8 + $0x50] sm:$0x1] %vm253_vm0, %v1565_v45  ;;  %v504_v58 = vcombine.high %v502_v37, %v502_v37  ;;  %v1616_v59 = vrot.slane %v1578_v47, %v1534_v25  ;;  %v1623_v61 = vcombine.high %v1589_v49, %v1589_v49  ;;  %v705_v62 = vcombine.high %v1592_v50, %v1592_v50 }
  0xa2   : > { %257 = vst.msk [vmem:[%s1555_s8 + $0x30] sm:$0x1] %vm253_vm0, %v1594_v51  ;;  %v1610_v57 = vrot.slane %v242_v53, %v1534_v25  ;;  %260 = vst.msk [vmem:[%s1555_s8 + $0x60] sm:$0x1] %vm253_vm0, %v242_v53  ;;  %v1619_v60 = vrot.slane %v503_v54, %v1526_v18  ;;  %v1628_v63 = vrot.slane %v688_v56, %v1534_v25 }
  0xa3   : > { %358 = vrot.lane.b32.xlu0 %v1560_v42, %s1430_s11  ;;  %296 = vrot.lane.b32.xlu1 %v1586_v48, %s1429_s10  ;;  %v1631_v0 = vrot.slane %v504_v58, %v1526_v18  ;;  %v674_v1 = vcombine.high %v672_v52, %v672_v52  ;;  %v244_v2 = vcombine.high %v1565_v45, %v1565_v45 }
  0xa4   : > { %v1640_v3 = vrot.slane %v495_v46, %v1526_v18  ;;  %v592_v4 = vrot.slane %v1623_v61, %v1606_v55  ;;  %v1645_v5 = vrot.slane %v705_v62, %v1534_v25  ;;  %v548_v8 = vrot.slane %v1619_v60, %v1534_v25 }
  0xa5   : > { %v584_v6 = vrot.slane %v1631_v0, %v1606_v55  ;;  %v702_v7 = vrot.slane %v674_v1, %v1526_v18  ;;  %v1653_v9 = vrot.slane %v244_v2, %v1534_v25  ;;  %261 = vst.msk [vmem:[%s1555_s8 + $0x70] sm:$0x1] %vm253_vm0, %v244_v2  ;;  %v1658_v10 = vrot.slane %v241_v43, %v1534_v25 }
  0xa6   : > { %v580_v11 = vrot.slane %v1631_v0, %v1534_v25  ;;  %v588_v12 = vrot.slane %v1623_v61, %v1534_v25  ;;  %v704_v13 = vcombine.high %v688_v56, %v688_v56  ;;  %v1669_v15 = vcombine.high %v1619_v60, %v1619_v60 }
  0xa7   : > { %390 = vrot.lane.b32.xlu0 %v1560_v42, %s1431_s17  ;;  %328 = vrot.lane.b32.xlu1 %v1586_v48, %s1428_s9  ;;  %v1665_v14 = vrot.slane %v702_v7, %v1534_v25  ;;  %v1673_v16 = vcombine.high %v1631_v0, %v1631_v0  ;;  %v706_v17 = vcombine.high %v702_v7, %v702_v7 }
  0xa8   : > { %v1680_v19 = vrot.slane %v704_v13, %v1534_v25  ;;  %v1684_v20 = vrot.slane %v1548_v36, %v1526_v18  ;;  %v948_v21 = vcombine.high %v1548_v36, %v1548_v36  ;;  %v564_v22 = vrot.slane %v1669_v15, %v1534_v25 }
  0xa9   : > { %v596_v26 = vrot.slane %v1673_v16, %v1534_v25  ;;  %v568_v27 = vrot.slane %v1669_v15, %v1606_v55  ;;  %v600_v28 = vrot.slane %v1673_v16, %v1606_v55  ;;  %v1697_v30 = vrot.slane %v706_v17, %v1534_v25 }
  0xaa   : > { %v985_v31 = vrot.slane %v1684_v20, %v1534_v25  ;;  %v1702_v32 = vrot.slane %v948_v21, %v1526_v18  ;;  %v1706_v33 = vcombine.high %v1684_v20, %v1684_v20  ;;  %v989_v34 = vrot.slane %v1684_v20, %v1606_v55 }
  0xab   : > { %422 = vrot.lane.b32.xlu0 %v1560_v42, %s1432_s19  ;;  %360 = vrot.lane.b32.xlu1 %v1586_v48, %s1430_s11  ;;  %v947_v35 = vrot.slane %v933_v29, %v1526_v18  ;;  %v1110_v36 = vrot.slane %v1532_v24, %v1526_v18  ;;  %v1103_v37 = vcombine.high %v1532_v24, %v1532_v24 }
  0xac   : > { %v993_v38 = vrot.slane %v1702_v32, %v1534_v25  ;;  %v1001_v23 = vrot.slane %v1706_v33, %v1534_v25  ;;  %v1728_v29 = vcombine.high %v1702_v32, %v1702_v32  ;;  %v997_v24 = vrot.slane %v1702_v32, %v1606_v55 }
  0xad   : > { %v1733_v39 = vrot.slane %v947_v35, %v1526_v18  ;;  %v1005_v41 = vrot.slane %v1706_v33, %v1606_v55  ;;  %v1742_v46 = vrot.slane %v1110_v36, %v1526_v18  ;;  %v1117_v52 = vrot.slane %v1103_v37, %v1526_v18 }
  0xae   : > { %v1009_v43 = vrot.slane %v1728_v29, %v1534_v25  ;;  %v1118_v62 = vcombine.high %v1110_v36, %v1110_v36  ;;  %v544_v13 = vrot.slane %v1640_v3, %v1606_v55  ;;  %v2442_v33 = vrot.slane %v1728_v29, %v1606_v55 }
  0xaf   : > { %454 = vrot.lane.b32.xlu0 %v1560_v42, %s1433_s20  ;;  %392 = vrot.lane.b32.xlu1 %v1586_v48, %s1431_s17  ;;  %v949_v42 = vcombine.high %v947_v35, %v947_v35  ;;  %v1017_v53 = vrot.slane %v1733_v39, %v1534_v25  ;;  %v1752_v56 = vcombine.high %v1733_v39, %v1733_v39 }
  0xb0   : > { %v1148_v1 = vcombine.high %v1742_v46, %v1742_v46  ;;  %v1765_v2 = vrot.slane %v1117_v52, %v1526_v18  ;;  %v1119_v21 = vcombine.high %v1117_v52, %v1117_v52  ;;  %v281_v52 = vrot.slane %v1552_v40, %v1534_v25 }
  0xb1   : > { %v1748_v54 = vrot.slane %v949_v42, %v1526_v18  ;;  %v2444_v29 = vrot.slane %v1733_v39, %v1606_v55 }
  0xb2   : > { %v1780_v37 = vrot.slane %v1148_v1, %v1534_v25  ;;  %v1149_v44 = vcombine.high %v1765_v2, %v1765_v2  ;;  %v1795_v1 = vrot.slane %v1118_v62, %v1526_v18  ;;  %v1801_v42 = vrot.slane %v1119_v21, %v1526_v18 }
  0xb3   : > { %739 = vrot.lane.b32.xlu0 %v1616_v59, %s1434_s24  ;;  %424 = vrot.lane.b32.xlu1 %v1586_v48, %s1432_s19  ;;  %v1025_v7 = vrot.slane %v1748_v54, %v1534_v25  ;;  %v1773_v17 = vcombine.high %v1748_v54, %v1748_v54  ;;  %v576_v21 = vrot.slane %v1589_v49, %v1606_v55 }
  0xb4   : > { %v1798_v36 = vrot.slane %v1149_v44, %v1534_v25  ;;  %v1159_v35 = vrot.slane %v1795_v1, %v1534_v25  ;;  %v1151_v44 = vcombine.high %v1801_v42, %v1801_v42  ;;  %v1830_v62 = vrot.slane %v1592_v50, %v1534_v25 }
  0xb5   : > { %v1041_v58 = vrot.slane %v1773_v17, %v1534_v25  ;;  %v572_v50 = vrot.slane %v1589_v49, %v1534_v25  ;;  %v533_v49 = vcombine.high %v1640_v3, %v1640_v3  ;;  %v2445_v39 = vrot.slane %v1748_v54, %v1606_v55 }
  0xb6   : > { %v1821_v40 = vrot.slane %v1151_v44, %v1534_v25 }
  0xb7   : > { %298 = vrot.lane.b32.xlu0 %v1658_v10, %s1429_s10  ;;  %456 = vrot.lane.b32.xlu1 %v1586_v48, %s1433_s20  ;;  %v1150_v48 = vcombine.high %v1795_v1, %v1795_v1 }
  0xb9   : > { %v1818_v18 = vrot.slane %v1150_v48, %v1534_v25  ;;  %v285_v48 = vrot.slane %v1565_v45, %v1534_v25  ;;  %v540_v45 = vrot.slane %v1640_v3, %v1534_v25 }
  0xbb   : > { %603 = vrot.lane.b32.xlu1 %v544_v13, %s1435_s25  ;;  %302 = vrot.lane.b32.xlu0 %v281_v52, %s1429_s10  ;;  %v277_v13 = vrot.slane %v1594_v51, %v1534_v25  ;;  %v703_v51 = vcombine.high %v1578_v47, %v1578_v47  ;;  %v552_v47 = vrot.slane %v1619_v60, %v1606_v55 }
  0xbf   : > { %619 = vrot.lane.b32.xlu1 %v576_v21, %s1435_s25  ;;  %330 = vrot.lane.b32.xlu0 %v1658_v10, %s1428_s9 }
  0xc3   : > { %741 = vrot.lane.b32.xlu1 %v1830_v62, %s1434_s24  ;;  %334 = vrot.lane.b32.xlu0 %v281_v52, %s1428_s9 }
  0xc7   : > { %300 = vrot.lane.b32.xlu1 %v277_v13, %s1429_s10  ;;  %362 = vrot.lane.b32.xlu0 %v1658_v10, %s1430_s11 }
  0xcb   : > { %366 = vrot.lane.b32.xlu0 %v281_v52, %s1430_s11  ;;  %304 = vrot.lane.b32.xlu1 %v285_v48, %s1429_s10 }
  0xcf   : > { %394 = vrot.lane.b32.xlu0 %v1658_v10, %s1431_s17  ;;  %332 = vrot.lane.b32.xlu1 %v277_v13, %s1428_s9 }
  0xd3   : > { %398 = vrot.lane.b32.xlu0 %v281_v52, %s1431_s17  ;;  %336 = vrot.lane.b32.xlu1 %v285_v48, %s1428_s9 }
  0xd7   : > { %426 = vrot.lane.b32.xlu0 %v1658_v10, %s1432_s19  ;;  %364 = vrot.lane.b32.xlu1 %v277_v13, %s1430_s11 }
  0xdb   : > { %430 = vrot.lane.b32.xlu0 %v281_v52, %s1432_s19  ;;  %368 = vrot.lane.b32.xlu1 %v285_v48, %s1430_s11 }
  0xdf   : > { %458 = vrot.lane.b32.xlu0 %v1658_v10, %s1433_s20  ;;  %396 = vrot.lane.b32.xlu1 %v277_v13, %s1431_s17  ;;  %v1870_v10 = vrot.slane %v703_v51, %v1534_v25 }
  0xe3   : > { %462 = vrot.lane.b32.xlu0 %v281_v52, %s1433_s20  ;;  %400 = vrot.lane.b32.xlu1 %v285_v48, %s1431_s17  ;;  %v560_v52 = vrot.slane %v533_v49, %v1606_v55 }
  0xe7   : > { %601 = vrot.lane.b32.xlu0 %v540_v45, %s1435_s25  ;;  %428 = vrot.lane.b32.xlu1 %v277_v13, %s1432_s19 }
  0xeb   : > { %617 = vrot.lane.b32.xlu0 %v572_v50, %s1435_s25  ;;  %432 = vrot.lane.b32.xlu1 %v285_v48, %s1432_s19 }
  0xef   : > { %743 = vrot.lane.b32.xlu0 %v1870_v10, %s1434_s24  ;;  %460 = vrot.lane.b32.xlu1 %v277_v13, %s1433_s20 }
  0xf3   : > { %747 = vrot.lane.b32.xlu0 %v1628_v63, %s1434_s24  ;;  %464 = vrot.lane.b32.xlu1 %v285_v48, %s1433_s20 }
  0xf7   : > { %306 = vrot.lane.b32.xlu0 %v1610_v57, %s1429_s10  ;;  %607 = vrot.lane.b32.xlu1 %v552_v47, %s1435_s25 }
  0xfb   : > { %338 = vrot.lane.b32.xlu0 %v1610_v57, %s1428_s9  ;;  %611 = vrot.lane.b32.xlu1 %v560_v52, %s1435_s25 }
  0xff   : > { %370 = vrot.lane.b32.xlu0 %v1610_v57, %s1430_s11  ;;  %623 = vrot.lane.b32.xlu1 %v584_v6, %s1435_s25  ;;  %v556_v6 = vrot.slane %v533_v49, %v1534_v25 }
 0x103   : > { %402 = vrot.lane.b32.xlu0 %v1610_v57, %s1431_s17  ;;  %627 = vrot.lane.b32.xlu1 %v592_v4, %s1435_s25 }
 0x107   : > { %434 = vrot.lane.b32.xlu0 %v1610_v57, %s1432_s19  ;;  %745 = vrot.lane.b32.xlu1 %v1645_v5, %s1434_s24 }
 0x10b   : > { %466 = vrot.lane.b32.xlu0 %v1610_v57, %s1433_s20  ;;  %749 = vrot.lane.b32.xlu1 %v1665_v14, %s1434_s24 }
 0x10f   : > { %605 = vrot.lane.b32.xlu0 %v548_v8, %s1435_s25  ;;  %308 = vrot.lane.b32.xlu1 %v1653_v9, %s1429_s10 }
 0x111   : > { %v327_v3 = vpop.permute.xlu0 %326  ;;  %v295_v4 = vpop.permute.xlu1 %294 }
 0x112   : > { %350 = vst.msk [vmem:[%s1555_s8 + $0x2] sm:$0x1] %vm253_vm0, %v327_v3  ;;  %318 = vst.msk [vmem:[%s1555_s8 + $0x1] sm:$0x1] %vm253_vm0, %v295_v4 }
 0x113   : > { %609 = vrot.lane.b32.xlu0 %v556_v6, %s1435_s25  ;;  %340 = vrot.lane.b32.xlu1 %v1653_v9, %s1428_s9  ;;  %s1230_s9 = sshll.u32 %s1555_s8, 4  ;;  %s2390_s9 = int_to_ptr.vmem [resolvable:$true] %s1230_s9 }
 0x114   : > { %s1364_s16 = scalar_lea.vmem %s2390_s9, 2048 }
 0x115   : > { %v359_v57 = vpop.permute.xlu0 %358  ;;  %v297_v60 = vpop.permute.xlu1 %296  ;;  %p1365_p11 = scmp.ne.s32.totalorder %s2390_s9, %s1364_s16 }
 0x116   : > { %382 = vst.msk [vmem:[%s1555_s8 + $0x3] sm:$0x1] %vm253_vm0, %v359_v57  ;;  %319 = vst.msk [vmem:[%s1555_s8 + $0x11] sm:$0x1] %vm253_vm0, %v297_v60 }
 0x117   : > { %621 = vrot.lane.b32.xlu0 %v580_v11, %s1435_s25  ;;  %372 = vrot.lane.b32.xlu1 %v1653_v9, %s1430_s11  ;;  %p1366_p12 = pnand %p1365_p11, %p1504_p5 }
 0x119   : > { %v391_v8 = vpop.permute.xlu0 %390  ;;  %v329_v44 = vpop.permute.xlu1 %328  ;;  %p1367_p13 = pneg %p1366_p12 }
 0x11a   : > { %414 = vst.msk [vmem:[%s1555_s8 + $0x4] sm:$0x1] %vm253_vm0, %v391_v8  ;;  %351 = vst.msk [vmem:[%s1555_s8 + $0x12] sm:$0x1] %vm253_vm0, %v329_v44 }
 0x11b   : > { %625 = vrot.lane.b32.xlu0 %v588_v12, %s1435_s25  ;;  %404 = vrot.lane.b32.xlu1 %v1653_v9, %s1431_s17  ;;  %s2388_s17 = scalar_lea.hbm %s2439_s3, %s1303_s7 }
 0x11d   : > { %v423_v0 = vpop.permute.xlu0 %422  ;;  %v361_v11 = vpop.permute.xlu1 %360 }
 0x11e   : > { %446 = vst.msk [vmem:[%s1555_s8 + $0x5] sm:$0x1] %vm253_vm0, %v423_v0  ;;  %383 = vst.msk [vmem:[%s1555_s8 + $0x13] sm:$0x1] %vm253_vm0, %v361_v11 }
 0x11f   : > { %751 = vrot.lane.b32.xlu0 %v1680_v19, %s1434_s24  ;;  %436 = vrot.lane.b32.xlu1 %v1653_v9, %s1432_s19  ;;  %s2396_s19 = scalar_lea.sflag [#allocation3], %s161_s6 }
 0x121   : > { %v455_v61 = vpop.permute.xlu0 %454  ;;  %v393_v12 = vpop.permute.xlu1 %392 }
 0x122   : > { %478 = vst.msk [vmem:[%s1555_s8 + $0x6] sm:$0x1] %vm253_vm0, %v455_v61  ;;  %415 = vst.msk [vmem:[%s1555_s8 + $0x14] sm:$0x1] %vm253_vm0, %v393_v12 }
 0x123   : > { %613 = vrot.lane.b32.xlu0 %v564_v22, %s1435_s25  ;;  %468 = vrot.lane.b32.xlu1 %v1653_v9, %s1433_s20  ;;  %s1443_s20 = smov [#allocation2]  }
 0x125   : > { %v740_v21 = vpop.permute.xlu0 %739  ;;  %v425_v13 = vpop.permute.xlu1 %424 }
 0x126   : > { %763 = vst.msk [vmem:[%s1555_s8 + $0x8] sm:$0x1] %vm253_vm0, %v740_v21  ;;  %447 = vst.msk [vmem:[%s1555_s8 + $0x15] sm:$0x1] %vm253_vm0, %v425_v13 }
 0x127   : > { %629 = vrot.lane.b32.xlu0 %v596_v26, %s1435_s25  ;;  %615 = vrot.lane.b32.xlu1 %v568_v27, %s1435_s25 }
 0x129   : > { %v299_v22 = vpop.permute.xlu0 %298  ;;  %v457_v9 = vpop.permute.xlu1 %456 }
 0x12a   : > { %320 = vst.msk [vmem:[%s1555_s8 + $0x21] sm:$0x1] %vm253_vm0, %v299_v22  ;;  %479 = vst.msk [vmem:[%s1555_s8 + $0x16] sm:$0x1] %vm253_vm0, %v457_v9 }
 0x12b   : > { %771 = vrot.lane.b32.xlu0 %v1616_v59, %s1436_s26  ;;  %631 = vrot.lane.b32.xlu1 %v600_v28, %s1435_s25 }
 0x12d   : > { %v1983_v15 = vpop.permute.xlu1 %603  ;;  %v303_v26 = vpop.permute.xlu0 %302 }
 0x12e   : > { %322 = vst.msk [vmem:[%s1555_s8 + $0x41] sm:$0x1] %vm253_vm0, %v303_v26 }
 0x12f   : > { %775 = vrot.lane.b32.xlu0 %v1870_v10, %s1436_s26  ;;  %753 = vrot.lane.b32.xlu1 %v1697_v30, %s1434_s24  ;;  %s1368_s24 = sshll.u32 %s1443_s20, 4  ;;  %s1369_s24 = int_to_ptr.vmem [resolvable:$false] %s1368_s24 }
 0x130   : > { %s1370_s25 = scalar_lea.vmem %s1369_s24, 4096  ;;  %p1371_p0 = scmp.lt.s32.totalorder %s2390_s9, %s1369_s24 }
 0x131   : > { %v1991_v27 = vpop.permute.xlu1 %619  ;;  %v331_v48 = vpop.permute.xlu0 %330  ;;  %p1372_p1 = scmp.lt.s32.totalorder %s1370_s25, %s1364_s16 }
 0x132   : > { %352 = vst.msk [vmem:[%s1555_s8 + $0x22] sm:$0x1] %vm253_vm0, %v331_v48 }
 0x133   : > { %779 = vrot.lane.b32.xlu0 %v1628_v63, %s1436_s26  ;;  %773 = vrot.lane.b32.xlu1 %v1830_v62, %s1436_s26  ;;  %p1373_p2 = por %p1372_p1, %p1371_p0 }
 0x135   : > { %v742_v16 = vpop.permute.xlu1 %741  ;;  %v335_v28 = vpop.permute.xlu0 %334  ;;  %p1374_p3 = pnand %p1373_p2, %p1367_p13 }
 0x136   : > { %764 = vst.msk [vmem:[%s1555_s8 + $0x18] sm:$0x1] %vm253_vm0, %v742_v16  ;;  %354 = vst.msk [vmem:[%s1555_s8 + $0x42] sm:$0x1] %vm253_vm0, %v335_v28 }
 0x137   : > { %783 = vrot.lane.b32.xlu0 %v1680_v19, %s1436_s26  ;;  %777 = vrot.lane.b32.xlu1 %v1645_v5, %s1436_s26 }
 0x139   : > { %v301_v45 = vpop.permute.xlu1 %300  ;;  %v363_v50 = vpop.permute.xlu0 %362 }
 0x13a   : > { %321 = vst.msk [vmem:[%s1555_s8 + $0x31] sm:$0x1] %vm253_vm0, %v301_v45  ;;  %384 = vst.msk [vmem:[%s1555_s8 + $0x23] sm:$0x1] %vm253_vm0, %v363_v50 }
 0x13b   : > { %803 = vrot.lane.b32.xlu0 %v1616_v59, %s1437_s27  ;;  %781 = vrot.lane.b32.xlu1 %v1665_v14, %s1436_s26 }
 0x13d   : > { %v367_v51 = vpop.permute.xlu0 %366  ;;  %v305_v47 = vpop.permute.xlu1 %304 }
 0x13e   : > { %386 = vst.msk [vmem:[%s1555_s8 + $0x43] sm:$0x1] %vm253_vm0, %v367_v51  ;;  %323 = vst.msk [vmem:[%s1555_s8 + $0x51] sm:$0x1] %vm253_vm0, %v305_v47 }
 0x13f   : > { %807 = vrot.lane.b32.xlu0 %v1870_v10, %s1437_s27  ;;  %785 = vrot.lane.b32.xlu1 %v1697_v30, %s1436_s26 }
 0x141   : > { %v395_v49 = vpop.permute.xlu0 %394  ;;  %v333_v52 = vpop.permute.xlu1 %332 }
 0x142   : > { %416 = vst.msk [vmem:[%s1555_s8 + $0x24] sm:$0x1] %vm253_vm0, %v395_v49  ;;  %353 = vst.msk [vmem:[%s1555_s8 + $0x32] sm:$0x1] %vm253_vm0, %v333_v52 }
 0x143   : > { %811 = vrot.lane.b32.xlu0 %v1628_v63, %s1437_s27  ;;  %805 = vrot.lane.b32.xlu1 %v1830_v62, %s1437_s27 }
 0x145   : > { %v399_v3 = vpop.permute.xlu0 %398  ;;  %v337_v4 = vpop.permute.xlu1 %336 }
 0x146   : > { %418 = vst.msk [vmem:[%s1555_s8 + $0x44] sm:$0x1] %vm253_vm0, %v399_v3  ;;  %355 = vst.msk [vmem:[%s1555_s8 + $0x52] sm:$0x1] %vm253_vm0, %v337_v4 }
 0x147   : > { %815 = vrot.lane.b32.xlu0 %v1680_v19, %s1437_s27  ;;  %809 = vrot.lane.b32.xlu1 %v1645_v5, %s1437_s27 }
 0x149   : > { %v427_v6 = vpop.permute.xlu0 %426  ;;  %v365_v57 = vpop.permute.xlu1 %364 }
 0x14a   : > { %448 = vst.msk [vmem:[%s1555_s8 + $0x25] sm:$0x1] %vm253_vm0, %v427_v6  ;;  %385 = vst.msk [vmem:[%s1555_s8 + $0x33] sm:$0x1] %vm253_vm0, %v365_v57 }
 0x14b   : > { %835 = vrot.lane.b32.xlu0 %v1616_v59, %s1438_s28  ;;  %813 = vrot.lane.b32.xlu1 %v1665_v14, %s1437_s27 }
 0x14d   : > { %v431_v60 = vpop.permute.xlu0 %430  ;;  %v369_v8 = vpop.permute.xlu1 %368 }
 0x14e   : > { %450 = vst.msk [vmem:[%s1555_s8 + $0x45] sm:$0x1] %vm253_vm0, %v431_v60  ;;  %387 = vst.msk [vmem:[%s1555_s8 + $0x53] sm:$0x1] %vm253_vm0, %v369_v8 }
 0x14f   : > { %839 = vrot.lane.b32.xlu0 %v1870_v10, %s1438_s28  ;;  %817 = vrot.lane.b32.xlu1 %v1697_v30, %s1437_s27 }
 0x151   : > { %v459_v44 = vpop.permute.xlu0 %458  ;;  %v397_v0 = vpop.permute.xlu1 %396 }
 0x152   : > { %480 = vst.msk [vmem:[%s1555_s8 + $0x26] sm:$0x1] %vm253_vm0, %v459_v44  ;;  %417 = vst.msk [vmem:[%s1555_s8 + $0x34] sm:$0x1] %vm253_vm0, %v397_v0  ;;  %v2447_v44 = vrot.slane %v1773_v17, %v1606_v55 }
 0x153   : > { %843 = vrot.lane.b32.xlu0 %v1628_v63, %s1438_s28  ;;  %837 = vrot.lane.b32.xlu1 %v1830_v62, %s1438_s28 }
 0x155   : > { %v463_v11 = vpop.permute.xlu0 %462  ;;  %v401_v61 = vpop.permute.xlu1 %400 }
 0x156   : > { %482 = vst.msk [vmem:[%s1555_s8 + $0x46] sm:$0x1] %vm253_vm0, %v463_v11  ;;  %419 = vst.msk [vmem:[%s1555_s8 + $0x54] sm:$0x1] %vm253_vm0, %v401_v61  ;;  %v2449_v61 = vrot.slane %v1765_v2, %v1534_v25 }
 0x157   : > { %847 = vrot.lane.b32.xlu0 %v1680_v19, %s1438_s28  ;;  %841 = vrot.lane.b32.xlu1 %v1645_v5, %s1438_s28 }
 0x159   : > { %v602_v12 = vpop.permute.xlu0 %601  ;;  %v429_v21 = vpop.permute.xlu1 %428 }
 0x15a   : > { %v634_v13 = vsel %vm633_vm1, %v602_v12, %v1983_v15  ;;  %449 = vst.msk [vmem:[%s1555_s8 + $0x35] sm:$0x1] %vm253_vm0, %v429_v21 }
 0x15b   : > { %650 = vst.msk [vmem:[%s1555_s8 + $0x7] sm:$0x1] %vm253_vm0, %v634_v13  ;;  %867 = vrot.lane.b32.xlu0 %v1616_v59, %s1439_s29  ;;  %845 = vrot.lane.b32.xlu1 %v1665_v14, %s1438_s28 }
 0x15d   : > { %v618_v22 = vpop.permute.xlu0 %617  ;;  %v433_v9 = vpop.permute.xlu1 %432 }
 0x15e   : > { %v638_v26 = vsel %vm633_vm1, %v618_v22, %v1991_v27  ;;  %451 = vst.msk [vmem:[%s1555_s8 + $0x55] sm:$0x1] %vm253_vm0, %v433_v9 }
 0x15f   : > { %654 = vst.msk [vmem:[%s1555_s8 + $0x47] sm:$0x1] %vm253_vm0, %v638_v26  ;;  %871 = vrot.lane.b32.xlu0 %v1870_v10, %s1439_s29  ;;  %849 = vrot.lane.b32.xlu1 %v1697_v30, %s1438_s28 }
 0x161   : > { %v744_v15 = vpop.permute.xlu0 %743  ;;  %v461_v48 = vpop.permute.xlu1 %460 }
 0x162   : > { %765 = vst.msk [vmem:[%s1555_s8 + $0x28] sm:$0x1] %vm253_vm0, %v744_v15  ;;  %481 = vst.msk [vmem:[%s1555_s8 + $0x36] sm:$0x1] %vm253_vm0, %v461_v48 }
 0x163   : > { %875 = vrot.lane.b32.xlu0 %v1628_v63, %s1439_s29  ;;  %869 = vrot.lane.b32.xlu1 %v1830_v62, %s1439_s29 }
 0x165   : > { %v748_v27 = vpop.permute.xlu0 %747  ;;  %v465_v16 = vpop.permute.xlu1 %464 }
 0x166   : > { %767 = vst.msk [vmem:[%s1555_s8 + $0x48] sm:$0x1] %vm253_vm0, %v748_v27  ;;  %483 = vst.msk [vmem:[%s1555_s8 + $0x56] sm:$0x1] %vm253_vm0, %v465_v16 }
 0x167   : > { %879 = vrot.lane.b32.xlu0 %v1680_v19, %s1439_s29  ;;  %873 = vrot.lane.b32.xlu1 %v1645_v5, %s1439_s29 }
 0x169   : > { %v307_v28 = vpop.permute.xlu0 %306  ;;  %v608_v45 = vpop.permute.xlu1 %607 }
 0x16a   : > { %324 = vst.msk [vmem:[%s1555_s8 + $0x61] sm:$0x1] %vm253_vm0, %v307_v28 }
 0x16b   : > { %899 = vrot.lane.b32.xlu0 %v1616_v59, %s1440_s30  ;;  %877 = vrot.lane.b32.xlu1 %v1665_v14, %s1439_s29 }
 0x16d   : > { %v339_v50 = vpop.permute.xlu0 %338  ;;  %v612_v51 = vpop.permute.xlu1 %611 }
 0x16e   : > { %356 = vst.msk [vmem:[%s1555_s8 + $0x62] sm:$0x1] %vm253_vm0, %v339_v50 }
 0x16f   : > { %1046 = vrot.lane.b32.xlu0 %v985_v31, %s1441_s4  ;;  %881 = vrot.lane.b32.xlu1 %v1697_v30, %s1439_s29 }
 0x171   : > { %v371_v47 = vpop.permute.xlu0 %370  ;;  %v624_v59 = vpop.permute.xlu1 %623 }
 0x172   : > { %388 = vst.msk [vmem:[%s1555_s8 + $0x63] sm:$0x1] %vm253_vm0, %v371_v47 }
 0x173   : > { %1050 = vrot.lane.b32.xlu0 %v993_v38, %s1441_s4  ;;  %901 = vrot.lane.b32.xlu1 %v1830_v62, %s1440_s30  ;;  %v2443_v62 = vrot.slane %v1752_v56, %v1534_v25 }
 0x175   : > { %v403_v49 = vpop.permute.xlu0 %402  ;;  %v628_v52 = vpop.permute.xlu1 %627 }
 0x176   : > { %420 = vst.msk [vmem:[%s1555_s8 + $0x64] sm:$0x1] %vm253_vm0, %v403_v49 }
 0x177   : > { %1054 = vrot.lane.b32.xlu0 %v1001_v23, %s1441_s4  ;;  %1048 = vrot.lane.b32.xlu1 %v989_v34, %s1441_s4 }
 0x179   : > { %v435_v31 = vpop.permute.xlu0 %434  ;;  %v746_v38 = vpop.permute.xlu1 %745 }
 0x17a   : > { %452 = vst.msk [vmem:[%s1555_s8 + $0x65] sm:$0x1] %vm253_vm0, %v435_v31  ;;  %766 = vst.msk [vmem:[%s1555_s8 + $0x38] sm:$0x1] %vm253_vm0, %v746_v38 }
 0x17b   : > { %1058 = vrot.lane.b32.xlu0 %v1009_v43, %s1441_s4  ;;  %1052 = vrot.lane.b32.xlu1 %v997_v24, %s1441_s4 }
 0x17d   : > { %v467_v20 = vpop.permute.xlu0 %466  ;;  %v750_v34 = vpop.permute.xlu1 %749 }
 0x17e   : > { %484 = vst.msk [vmem:[%s1555_s8 + $0x66] sm:$0x1] %vm253_vm0, %v467_v20  ;;  %768 = vst.msk [vmem:[%s1555_s8 + $0x58] sm:$0x1] %vm253_vm0, %v750_v34 }
 0x17f   : > { %1062 = vrot.lane.b32.xlu0 %v1017_v53, %s1441_s4  ;;  %1056 = vrot.lane.b32.xlu1 %v1005_v41, %s1441_s4 }
 0x181   : > { %v606_v32 = vpop.permute.xlu0 %605  ;;  %v309_v23 = vpop.permute.xlu1 %308 }
 0x182   : > { %v635_v24 = vsel %vm633_vm1, %v606_v32, %v608_v45  ;;  %325 = vst.msk [vmem:[%s1555_s8 + $0x71] sm:$0x1] %vm253_vm0, %v309_v23 }
 0x183   : > { %651 = vst.msk [vmem:[%s1555_s8 + $0x17] sm:$0x1] %vm253_vm0, %v635_v24  ;;  %1066 = vrot.lane.b32.xlu0 %v1025_v7, %s1441_s4  ;;  %1060 = vrot.lane.b32.xlu1 %v2442_v33, %s1441_s4 }
 0x185   : > { %v610_v41 = vpop.permute.xlu0 %609  ;;  %v341_v43 = vpop.permute.xlu1 %340 }
 0x186   : > { %v636_v53 = vsel %vm633_vm1, %v610_v41, %v612_v51  ;;  %357 = vst.msk [vmem:[%s1555_s8 + $0x72] sm:$0x1] %vm253_vm0, %v341_v43 }
 0x187   : > { %652 = vst.msk [vmem:[%s1555_s8 + $0x27] sm:$0x1] %vm253_vm0, %v636_v53  ;;  %1070 = vrot.lane.b32.xlu0 %v2443_v62, %s1441_s4  ;;  %1064 = vrot.lane.b32.xlu1 %v2444_v29, %s1441_s4 }
 0x189   : > { %v622_v7 = vpop.permute.xlu0 %621  ;;  %v373_v3 = vpop.permute.xlu1 %372 }
 0x18a   : > { %v639_v4 = vsel %vm633_vm1, %v622_v7, %v624_v59  ;;  %389 = vst.msk [vmem:[%s1555_s8 + $0x73] sm:$0x1] %vm253_vm0, %v373_v3 }
 0x18b   : > { %655 = vst.msk [vmem:[%s1555_s8 + $0x57] sm:$0x1] %vm253_vm0, %v639_v4  ;;  %1074 = vrot.lane.b32.xlu0 %v1041_v58, %s1441_s4  ;;  %1068 = vrot.lane.b32.xlu1 %v2445_v39, %s1441_s4  ;;  %v2446_v58 = vrot.slane %v1752_v56, %v1606_v55  ;;  %v2448_v55 = vrot.slane %v1742_v46, %v1534_v25 }
 0x18d   : > { %v626_v6 = vpop.permute.xlu0 %625  ;;  %v405_v57 = vpop.permute.xlu1 %404 }
 0x18e   : > { %v640_v60 = vsel %vm633_vm1, %v626_v6, %v628_v52  ;;  %421 = vst.msk [vmem:[%s1555_s8 + $0x74] sm:$0x1] %vm253_vm0, %v405_v57 }
 0x18f   : > { %656 = vst.msk [vmem:[%s1555_s8 + $0x67] sm:$0x1] %vm253_vm0, %v640_v60  ;;  %903 = vrot.lane.b32.xlu0 %v1870_v10, %s1440_s30  ;;  %1072 = vrot.lane.b32.xlu1 %v2446_v58, %s1441_s4 }
 0x191   : > { %v752_v54 = vpop.permute.xlu0 %751  ;;  %v437_v8 = vpop.permute.xlu1 %436 }
 0x192   : > { %769 = vst.msk [vmem:[%s1555_s8 + $0x68] sm:$0x1] %vm253_vm0, %v752_v54  ;;  %453 = vst.msk [vmem:[%s1555_s8 + $0x75] sm:$0x1] %vm253_vm0, %v437_v8 }
 0x193   : > { %907 = vrot.lane.b32.xlu0 %v1628_v63, %s1440_s30  ;;  %1076 = vrot.lane.b32.xlu1 %v2447_v44, %s1441_s4 }
 0x195   : > { %v614_v10 = vpop.permute.xlu0 %613  ;;  %v469_v56 = vpop.permute.xlu1 %468 }
 0x196   : > { %485 = vst.msk [vmem:[%s1555_s8 + $0x76] sm:$0x1] %vm253_vm0, %v469_v56 }
 0x197   : > { %911 = vrot.lane.b32.xlu0 %v1680_v19, %s1440_s30  ;;  %905 = vrot.lane.b32.xlu1 %v1645_v5, %s1440_s30 }
 0x199   : > { %v630_v0 = vpop.permute.xlu0 %629  ;;  %v616_v63 = vpop.permute.xlu1 %615 }
 0x19a   : > { %v637_v11 = vsel %vm633_vm1, %v614_v10, %v616_v63 }
 0x19b   : > { %653 = vst.msk [vmem:[%s1555_s8 + $0x37] sm:$0x1] %vm253_vm0, %v637_v11  ;;  %1184 = vrot.lane.b32.xlu0 %v2448_v55, %s1442_s5  ;;  %909 = vrot.lane.b32.xlu1 %v1665_v14, %s1440_s30 }
 0x19d   : > { %v772_v19 = vpop.permute.xlu0 %771  ;;  %v632_v5 = vpop.permute.xlu1 %631 }
 0x19e   : > { %795 = vst.msk [vmem:[%s1555_s8 + $0x9] sm:$0x1] %vm253_vm0, %v772_v19  ;;  %v641_v17 = vsel %vm633_vm1, %v630_v0, %v632_v5 }
 0x19f   : > { %657 = vst.msk [vmem:[%s1555_s8 + $0x77] sm:$0x1] %vm253_vm0, %v641_v17  ;;  %1188 = vrot.lane.b32.xlu0 %v1780_v37, %s1442_s5  ;;  %913 = vrot.lane.b32.xlu1 %v1697_v30, %s1440_s30 }
 0x1a1   : > { %v776_v46 = vpop.permute.xlu0 %775  ;;  %v754_v14 = vpop.permute.xlu1 %753 }
 0x1a2   : > { %797 = vst.msk [vmem:[%s1555_s8 + $0x29] sm:$0x1] %vm253_vm0, %v776_v46  ;;  %770 = vst.msk [vmem:[%s1555_s8 + $0x78] sm:$0x1] %vm253_vm0, %v754_v14 }
 0x1a3   : > { %1192 = vrot.lane.b32.xlu0 %v2449_v61, %s1442_s5  ;;  %1186 = vrot.lane.b32.xlu1 %v1159_v35, %s1442_s5  ;;  %v2450_v35 = vrot.slane %v1801_v42, %v1534_v25 }
 0x1a5   : > { %v780_v30 = vpop.permute.xlu0 %779  ;;  %v774_v37 = vpop.permute.xlu1 %773 }
 0x1a6   : > { %799 = vst.msk [vmem:[%s1555_s8 + $0x49] sm:$0x1] %vm253_vm0, %v780_v30  ;;  %796 = vst.msk [vmem:[%s1555_s8 + $0x19] sm:$0x1] %vm253_vm0, %v774_v37 }
 0x1a7   : > { %1196 = vrot.lane.b32.xlu0 %v1798_v36, %s1442_s5  ;;  %1190 = vrot.lane.b32.xlu1 %v1818_v18, %s1442_s5 }
 0x1a9   : > { %v784_v2 = vpop.permute.xlu0 %783  ;;  %v778_v12 = vpop.permute.xlu1 %777 }
 0x1aa   : > { %801 = vst.msk [vmem:[%s1555_s8 + $0x69] sm:$0x1] %vm253_vm0, %v784_v2  ;;  %798 = vst.msk [vmem:[%s1555_s8 + $0x39] sm:$0x1] %vm253_vm0, %v778_v12 }
 0x1ab   : > { %1194 = vrot.lane.b32.xlu1 %v2450_v35, %s1442_s5 }
 0x1ad   : > { %v804_v1 = vpop.permute.xlu0 %803  ;;  %v782_v36 = vpop.permute.xlu1 %781 }
 0x1ae   : > { %827 = vst.msk [vmem:[%s1555_s8 + $0xa] sm:$0x1] %vm253_vm0, %v804_v1  ;;  %800 = vst.msk [vmem:[%s1555_s8 + $0x59] sm:$0x1] %vm253_vm0, %v782_v36 }
 0x1af   : > { %1198 = vrot.lane.b32.xlu1 %v1821_v40, %s1442_s5 }
 0x1b1   : > { %v808_v18 = vpop.permute.xlu0 %807  ;;  %v786_v21 = vpop.permute.xlu1 %785 }
 0x1b2   : > { %829 = vst.msk [vmem:[%s1555_s8 + $0x2a] sm:$0x1] %vm253_vm0, %v808_v18  ;;  %802 = vst.msk [vmem:[%s1555_s8 + $0x79] sm:$0x1] %vm253_vm0, %v786_v21 }
 0x1b5   : > { %v812_v25 = vpop.permute.xlu0 %811  ;;  %v806_v42 = vpop.permute.xlu1 %805 }
 0x1b6   : > { %831 = vst.msk [vmem:[%s1555_s8 + $0x4a] sm:$0x1] %vm253_vm0, %v812_v25  ;;  %828 = vst.msk [vmem:[%s1555_s8 + $0x1a] sm:$0x1] %vm253_vm0, %v806_v42 }
 0x1b9   : > { %v816_v13 = vpop.permute.xlu0 %815  ;;  %v810_v22 = vpop.permute.xlu1 %809 }
 0x1ba   : > { %833 = vst.msk [vmem:[%s1555_s8 + $0x6a] sm:$0x1] %vm253_vm0, %v816_v13  ;;  %830 = vst.msk [vmem:[%s1555_s8 + $0x3a] sm:$0x1] %vm253_vm0, %v810_v22 }
 0x1bd   : > { %v836_v40 = vpop.permute.xlu0 %835  ;;  %v814_v9 = vpop.permute.xlu1 %813 }
 0x1be   : > { %859 = vst.msk [vmem:[%s1555_s8 + $0xb] sm:$0x1] %vm253_vm0, %v836_v40  ;;  %832 = vst.msk [vmem:[%s1555_s8 + $0x5a] sm:$0x1] %vm253_vm0, %v814_v9 }
 0x1c1   : > { %v840_v26 = vpop.permute.xlu0 %839  ;;  %v818_v15 = vpop.permute.xlu1 %817 }
 0x1c2   : > { %861 = vst.msk [vmem:[%s1555_s8 + $0x2b] sm:$0x1] %vm253_vm0, %v840_v26  ;;  %834 = vst.msk [vmem:[%s1555_s8 + $0x7a] sm:$0x1] %vm253_vm0, %v818_v15 }
 0x1c5   : > { %v844_v48 = vpop.permute.xlu0 %843  ;;  %v838_v27 = vpop.permute.xlu1 %837 }
 0x1c6   : > { %863 = vst.msk [vmem:[%s1555_s8 + $0x4b] sm:$0x1] %vm253_vm0, %v844_v48  ;;  %860 = vst.msk [vmem:[%s1555_s8 + $0x1b] sm:$0x1] %vm253_vm0, %v838_v27 }
 0x1c9   : > { %v848_v16 = vpop.permute.xlu0 %847  ;;  %v842_v28 = vpop.permute.xlu1 %841 }
 0x1ca   : > { %865 = vst.msk [vmem:[%s1555_s8 + $0x6b] sm:$0x1] %vm253_vm0, %v848_v16  ;;  %862 = vst.msk [vmem:[%s1555_s8 + $0x3b] sm:$0x1] %vm253_vm0, %v842_v28 }
 0x1cd   : > { %v868_v45 = vpop.permute.xlu0 %867  ;;  %v846_v50 = vpop.permute.xlu1 %845 }
 0x1ce   : > { %891 = vst.msk [vmem:[%s1555_s8 + $0xc] sm:$0x1] %vm253_vm0, %v868_v45  ;;  %864 = vst.msk [vmem:[%s1555_s8 + $0x5b] sm:$0x1] %vm253_vm0, %v846_v50 }
 0x1d1   : > { %v872_v51 = vpop.permute.xlu0 %871  ;;  %v850_v47 = vpop.permute.xlu1 %849 }
 0x1d2   : > { %893 = vst.msk [vmem:[%s1555_s8 + $0x2c] sm:$0x1] %vm253_vm0, %v872_v51  ;;  %866 = vst.msk [vmem:[%s1555_s8 + $0x7b] sm:$0x1] %vm253_vm0, %v850_v47 }
 0x1d5   : > { %v876_v59 = vpop.permute.xlu0 %875  ;;  %v870_v49 = vpop.permute.xlu1 %869 }
 0x1d6   : > { %895 = vst.msk [vmem:[%s1555_s8 + $0x4c] sm:$0x1] %vm253_vm0, %v876_v59  ;;  %892 = vst.msk [vmem:[%s1555_s8 + $0x1c] sm:$0x1] %vm253_vm0, %v870_v49 }
 0x1d9   : > { %v880_v52 = vpop.permute.xlu0 %879  ;;  %v874_v31 = vpop.permute.xlu1 %873 }
 0x1da   : > { %897 = vst.msk [vmem:[%s1555_s8 + $0x6c] sm:$0x1] %vm253_vm0, %v880_v52  ;;  %894 = vst.msk [vmem:[%s1555_s8 + $0x3c] sm:$0x1] %vm253_vm0, %v874_v31 }
 0x1dd   : > { %v900_v38 = vpop.permute.xlu0 %899  ;;  %v878_v20 = vpop.permute.xlu1 %877 }
 0x1de   : > { %923 = vst.msk [vmem:[%s1555_s8 + $0xd] sm:$0x1] %vm253_vm0, %v900_v38  ;;  %896 = vst.msk [vmem:[%s1555_s8 + $0x5c] sm:$0x1] %vm253_vm0, %v878_v20 }
 0x1e1   : > { %v1047_v34 = vpop.permute.xlu0 %1046  ;;  %v882_v32 = vpop.permute.xlu1 %881 }
 0x1e2   : > { %898 = vst.msk [vmem:[%s1555_s8 + $0x7c] sm:$0x1] %vm253_vm0, %v882_v32 }
 0x1e5   : > { %v1051_v23 = vpop.permute.xlu0 %1050  ;;  %v902_v24 = vpop.permute.xlu1 %901 }
 0x1e6   : > { %924 = vst.msk [vmem:[%s1555_s8 + $0x1d] sm:$0x1] %vm253_vm0, %v902_v24 }
 0x1e9   : > { %v1055_v33 = vpop.permute.xlu0 %1054  ;;  %v1049_v41 = vpop.permute.xlu1 %1048 }
 0x1ea   : > { %v1079_v43 = vsel %vm1078_vm2, %v1047_v34, %v1049_v41 }
 0x1eb   : > { %1095 = vst.msk [vmem:[%s1555_s8 + $0xe] sm:$0x1] %vm253_vm0, %v1079_v43 }
 0x1ed   : > { %v1059_v53 = vpop.permute.xlu0 %1058  ;;  %v1053_v62 = vpop.permute.xlu1 %1052 }
 0x1ee   : > { %v1080_v29 = vsel %vm1078_vm2, %v1051_v23, %v1053_v62 }
 0x1ef   : > { %1096 = vst.msk [vmem:[%s1555_s8 + $0x1e] sm:$0x1] %vm253_vm0, %v1080_v29 }
 0x1f1   : > { %v1063_v7 = vpop.permute.xlu0 %1062  ;;  %v1057_v3 = vpop.permute.xlu1 %1056 }
 0x1f2   : > { %v1081_v4 = vsel %vm1078_vm2, %v1055_v33, %v1057_v3 }
 0x1f3   : > { %1097 = vst.msk [vmem:[%s1555_s8 + $0x2e] sm:$0x1] %vm253_vm0, %v1081_v4 }
 0x1f5   : > { %v1067_v39 = vpop.permute.xlu0 %1066  ;;  %v1061_v6 = vpop.permute.xlu1 %1060 }
 0x1f6   : > { %v1082_v57 = vsel %vm1078_vm2, %v1059_v53, %v1061_v6 }
 0x1f7   : > { %1098 = vst.msk [vmem:[%s1555_s8 + $0x3e] sm:$0x1] %vm253_vm0, %v1082_v57 }
 0x1f9   : > { %v1071_v60 = vpop.permute.xlu0 %1070  ;;  %v1065_v58 = vpop.permute.xlu1 %1064 }
 0x1fa   : > { %v1083_v54 = vsel %vm1078_vm2, %v1063_v7, %v1065_v58 }
 0x1fb   : > { %1099 = vst.msk [vmem:[%s1555_s8 + $0x4e] sm:$0x1] %vm253_vm0, %v1083_v54 }
 0x1fd   : > { %v1075_v8 = vpop.permute.xlu0 %1074  ;;  %v1069_v44 = vpop.permute.xlu1 %1068 }
 0x1fe   : > { %v1084_v10 = vsel %vm1078_vm2, %v1067_v39, %v1069_v44 }
 0x1ff   : > { %1100 = vst.msk [vmem:[%s1555_s8 + $0x5e] sm:$0x1] %vm253_vm0, %v1084_v10 }
 0x201   : > { %v904_v56 = vpop.permute.xlu0 %903  ;;  %v1073_v0 = vpop.permute.xlu1 %1072 }
 0x202   : > { %925 = vst.msk [vmem:[%s1555_s8 + $0x2d] sm:$0x1] %vm253_vm0, %v904_v56  ;;  %v1085_v63 = vsel %vm1078_vm2, %v1071_v60, %v1073_v0 }
 0x203   : > { %1101 = vst.msk [vmem:[%s1555_s8 + $0x6e] sm:$0x1] %vm253_vm0, %v1085_v63 }
 0x205   : > { %v908_v11 = vpop.permute.xlu0 %907  ;;  %v1077_v55 = vpop.permute.xlu1 %1076 }
 0x206   : > { %927 = vst.msk [vmem:[%s1555_s8 + $0x4d] sm:$0x1] %vm253_vm0, %v908_v11  ;;  %v1086_v19 = vsel %vm1078_vm2, %v1075_v8, %v1077_v55 }
 0x207   : > { %1102 = vst.msk [vmem:[%s1555_s8 + $0x7e] sm:$0x1] %vm253_vm0, %v1086_v19 }
 0x209   : > { %v912_v5 = vpop.permute.xlu0 %911  ;;  %v906_v17 = vpop.permute.xlu1 %905 }
 0x20a   : > { %929 = vst.msk [vmem:[%s1555_s8 + $0x6d] sm:$0x1] %vm253_vm0, %v912_v5  ;;  %926 = vst.msk [vmem:[%s1555_s8 + $0x3d] sm:$0x1] %vm253_vm0, %v906_v17 }
 0x20d   : > { %v1185_v46 = vpop.permute.xlu0 %1184  ;;  %v910_v14 = vpop.permute.xlu1 %909 }
 0x20e   : > { %1208 = vst.msk [vmem:[%s1555_s8 + $0xf] sm:$0x1] %vm253_vm0, %v1185_v46  ;;  %928 = vst.msk [vmem:[%s1555_s8 + $0x5d] sm:$0x1] %vm253_vm0, %v910_v14 }
 0x211   : > { %v1189_v61 = vpop.permute.xlu0 %1188  ;;  %v914_v30 = vpop.permute.xlu1 %913 }
 0x212   : > { %1210 = vst.msk [vmem:[%s1555_s8 + $0x2f] sm:$0x1] %vm253_vm0, %v1189_v61  ;;  %930 = vst.msk [vmem:[%s1555_s8 + $0x7d] sm:$0x1] %vm253_vm0, %v914_v30 }
 0x215   : > { %v1193_v37 = vpop.permute.xlu0 %1192  ;;  %v1187_v2 = vpop.permute.xlu1 %1186 }
 0x216   : > { %1212 = vst.msk [vmem:[%s1555_s8 + $0x4f] sm:$0x1] %vm253_vm0, %v1193_v37  ;;  %1209 = vst.msk [vmem:[%s1555_s8 + $0x1f] sm:$0x1] %vm253_vm0, %v1187_v2 }
 0x219   : > { %v1197_v12 = vpop.permute.xlu0 %1196  ;;  %v1191_v35 = vpop.permute.xlu1 %1190 }
 0x21a   : > { %1214 = vst.msk [vmem:[%s1555_s8 + $0x6f] sm:$0x1] %vm253_vm0, %v1197_v12  ;;  %1211 = vst.msk [vmem:[%s1555_s8 + $0x3f] sm:$0x1] %vm253_vm0, %v1191_v35 }
 0x21d   : > { %v1195_v1 = vpop.permute.xlu1 %1194 }
 0x21e   : > { %1213 = vst.msk [vmem:[%s1555_s8 + $0x5f] sm:$0x1] %vm253_vm0, %v1195_v1 }
 0x221   : > { %v1199_v36 = vpop.permute.xlu1 %1198 }
 0x222   : > { %1215 = vst.msk [vmem:[%s1555_s8 + $0x7f] sm:$0x1] %vm253_vm0, %v1199_v36 }
 0x223   : > { %1377 = shalt.err (!%p1374_p3)
}
 0x224   : > { %s1378_s6 = scalar_lea.hbm %s2388_s17, 2048  ;;  %s1382_s27 = scalar_lea.hbm %s2439_s3, 4096 }
 0x225   : > { %p1379_p4 = scmp.ne.s32.totalorder %s2388_s17, %s1378_s6  ;;  %p1383_p9 = scmp.lt.s32.totalorder %s2388_s17, %s2439_s3 }
 0x226   : > { %p1384_p10 = scmp.lt.s32.totalorder %s1382_s27, %s1378_s6 }
 0x227   : > { %p1380_p7 = pnand %p1379_p4, %p1504_p5 }
 0x228   : > { %p1385_p11 = por %p1384_p10, %p1383_p9 }
 0x229   : > { %p1381_p8 = pneg %p1380_p7 }
 0x22b   : > { %p1386_p12 = pnand %p1385_p11, %p1381_p8 }
 0x22d   : > { %1389 = shalt.err (!%p1386_p12)
}
 0x22e   : > { %s1444_s30 = smov 128   ;;  %s1445_s4 = smov 8  }
 0x22f   : > { %1305 = dma.vmem_to_hbm [thread:$0]  (%p1504_p5), %s2390_s9, 2048, %s2388_s17, %s2396_s19, %s1444_s30, %s1444_s30, %s1445_s4  }
 0x230 PF: > { %p1311_p13 = scmp.ge.s32.totalorder %s1424_s15, 2  ;;  %s1245_s5 = sand.u32 1, %s1412_s12  }
 0x231   : > { %s1246_s7 = scalar_lea.sflag [#allocation3], %s1245_s5 }
 0x232   : > { %p1308_p0 = pnand %p1311_p13, %p1508_p6 }
 0x234   : > { %p1309_p1 = pneg %p1308_p0 }
 0x236   : > { %1407 = dma.done.wait (%p1309_p1), %s1246_s7, 2048  }
 0x237   : > { %1409 = vsyncadd (%p1309_p1), %s1246_s7, 4294965248  ;;  %p13_p2 = scmp.ge.s32.totalorder %s1491_s18, 4   ;;  %s2451_s12 = smov %s1416_s13 }
 0x238   : > { %s2452_s13 = smov %s1420_s14  ;;  %s2453_s14 = smov %s1502_s21 }
 0x239   : > { %s2454_s15 = smov %s1491_s18  ;;  %15 = sbr.rel (!%p13_p2) target bundleno = 3 (0x3), region = 67 }
 0x23e   :  { %1251 = vsyncpa [#allocation3], 1 }
 0x23f   :  { %1253 = vsyncpa [#allocation3 + $0x1], 1 }

</bundles_post_ra>
